<compile_context>
chip_gen: v6e
topology: v6e:2x2x1
jax: 0.10.0
libtpu: 0.0.40
codegen_flags: <defaults>
</compile_context>

<pallas_src>
import functools

import jax
import jax.numpy as jnp
from jax.experimental import pallas as pl
from jax.experimental.pallas import tpu as pltpu

HIDDEN = 64          # hidden_dim in the reference script
H2 = 2 * HIDDEN      # 128 == one full vreg lane width
NUM_HEADS = 4
OUT_DIM = 2
FC1_DIM = 128
BN_EPS = 1e-5


# --------------------------------------------------------------------------- #
# Kernel
# --------------------------------------------------------------------------- #
def bigru_mha_kernel(
    ocr_ref, claim_ref,                    # (bm, D) f32 activation tiles
    wg_o_ref, bg_o_ref, bhn_o_ref,         # gru_ocr fused: (D,6H) bf16, (1,6H) f32, (1,2H) f32
    wg_c_ref, bg_c_ref, bhn_c_ref,         # gru_claim fused
    m_ref, c_ref,                          # folded attention: (2H,2H) bf16, (1,2H) f32
    w1_ref, b1_ref,                        # fc1 (BN folded): (4H,128) bf16, (1,128) f32
    w2_ref, b2_ref,                        # fc2: (128,2) bf16, (1,2) f32
    out_ref,                               # (bm, 2) f32
):
    def bigru(x_ref, wg_ref, bg_ref, bhn_ref):
        # Cast to bf16 in-kernel (no wrapper-side cast pass over HBM).
        x = x_ref[...].astype(jnp.bfloat16)
        # One fused gate matmul per stream; columns are
        # [r_f|r_b | z_f|z_b | n_f|n_b], each block 2H=128 lanes wide.
        g = jnp.dot(x, wg_ref[...], preferred_element_type=jnp.float32) + bg_ref[...]
        r = jax.nn.sigmoid(g[:, 0:H2])                         # f32 elementwise (v5e-safe)
        z = jax.nn.sigmoid(g[:, H2:2 * H2])
        n = jnp.tanh(g[:, 2 * H2:3 * H2] + r * bhn_ref[...])   # h_prev = 0 => only bias_hh_n
        return (1.0 - z) * n                                   # == [h_fwd | h_bwd]

    h_o = bigru(ocr_ref, wg_o_ref, bg_o_ref, bhn_o_ref)        # (bm, 2H) f32
    h_c = bigru(claim_ref, wg_c_ref, bg_c_ref, bhn_c_ref)      # (bm, 2H) f32
    bm = h_o.shape[0]

    # Folded single-key attention: attn(x) = x @ (Wv@Wo) + (bv@Wo + bo).
    # Both streams in ONE matmul by stacking on the sublane (M) axis.
    h = jnp.concatenate([h_o, h_c], axis=0).astype(jnp.bfloat16)   # (2*bm, 2H)
    a = jnp.dot(h, m_ref[...], preferred_element_type=jnp.float32) + c_ref[...]

    # fc1 (BatchNorm folded) as a single K=256 matmul; the lane-concat of the
    # two aligned 128-lane halves reproduces `combined` exactly.
    combined = jnp.concatenate([a[:bm], a[bm:]], axis=1).astype(jnp.bfloat16)  # (bm, 4H)
    x = jnp.dot(combined, w1_ref[...], preferred_element_type=jnp.float32) + b1_ref[...]
    x = jnp.maximum(x, 0.0)                                    # ReLU
    # TODO(synk): Dropout(0.3) is identity at inference and is not applied.
    out = (jnp.dot(x.astype(jnp.bfloat16), w2_ref[...],
                   preferred_element_type=jnp.float32) + b2_ref[...])
    # NOTE: (bm, 2) output is lane-sparse (masked vst) -- total bytes are tiny,
    # accepted knowingly.
    out_ref[...] = out.astype(out_ref.dtype)


# --------------------------------------------------------------------------- #
# Parameters
# --------------------------------------------------------------------------- #
def init_params(key, input_dim, hidden_dim, output_dim):
    """Deterministic synthetic master parameters (f32), shaped like the torch module
    but with Linear / GRU weights pre-transposed to [in, out] and GRU gate weights
    stored gate-major (r, z, n) as (3, in, H)."""
    E = 2 * hidden_dim
    keys = iter(jax.random.split(key, 32))

    def rnd(shape, scale=0.05):
        return (scale * jax.random.normal(next(keys), shape)).astype(jnp.float32)

    def gru_dir():
        # torch weight_ih_l0 is (3H, D) with gates [r; z; n]; stored here
        # gate-major & transposed as (3, D, H).  weight_hh is unused (h0 = 0).
        return (rnd((3, input_dim, hidden_dim)),
                rnd((3, 1, hidden_dim)),       # bias_ih, gate-major
                rnd((3, 1, hidden_dim)))       # bias_hh, gate-major

    p = {
        "gru_ocr_f": gru_dir(), "gru_ocr_b": gru_dir(),
        "gru_claim_f": gru_dir(), "gru_claim_b": gru_dir(),
        # multihead attention: V slice of in_proj (transposed) + out_proj (transposed)
        "wv": rnd((E, E)), "bv": rnd((1, E)),
        "wo": rnd((E, E)), "bo": rnd((1, E)),
        "w1": rnd((2 * E, FC1_DIM)), "b1": rnd((1, FC1_DIM)),
        "w2": rnd((FC1_DIM, output_dim)), "b2": rnd((1, output_dim)),
        # BatchNorm1d(128) eval-mode running stats / affine (fresh init).
        "bn_gamma": jnp.ones((1, FC1_DIM), jnp.float32),
        "bn_beta": jnp.zeros((1, FC1_DIM), jnp.float32),
        "bn_mean": jnp.zeros((1, FC1_DIM), jnp.float32),
        "bn_var": jnp.ones((1, FC1_DIM), jnp.float32),
    }
    return p


def prepare_params(p):
    """Fold / fuse master params into the packed kernel operands (weights bf16)."""

    def pack_stream(pf, pb):
        wf, bif, bhf = pf
        wb, bib, bhb = pb
        # gate columns: [r_f | r_b | z_f | z_b | n_f | n_b]  (each H wide)
        wg = jnp.concatenate([wf[0], wb[0], wf[1], wb[1], wf[2], wb[2]], axis=1)
        bg = jnp.concatenate([bif[0] + bhf[0], bib[0] + bhb[0],
                              bif[1] + bhf[1], bib[1] + bhb[1],
                              bif[2],          bib[2]], axis=1)
        bhn = jnp.concatenate([bhf[2], bhb[2]], axis=1)     # bias_hh_n, [fwd | bwd]
        return wg.astype(jnp.bfloat16), bg.astype(jnp.float32), bhn.astype(jnp.float32)

    wg_o, bg_o, bhn_o = pack_stream(p["gru_ocr_f"], p["gru_ocr_b"])
    wg_c, bg_c, bhn_c = pack_stream(p["gru_claim_f"], p["gru_claim_b"])

    # Attention fold (softmax over one key == 1): attn(x) = x @ (Wv@Wo) + (bv@Wo + bo)
    m_attn = (p["wv"] @ p["wo"]).astype(jnp.bfloat16)
    c_attn = (p["bv"] @ p["wo"] + p["bo"]).astype(jnp.float32)

    # BatchNorm1d (eval) folded into fc1 (kept as the full (2E,128) = K=256 slab).
    scale = p["bn_gamma"] / jnp.sqrt(p["bn_var"] + BN_EPS)   # (1, 128)
    shift = p["bn_beta"] - p["bn_mean"] * scale
    w1f = (p["w1"] * scale).astype(jnp.bfloat16)             # (2E, 128)
    b1f = (p["b1"] * scale + shift).astype(jnp.float32)

    return {
        "wg_o": wg_o, "bg_o": bg_o, "bhn_o": bhn_o,
        "wg_c": wg_c, "bg_c": bg_c, "bhn_c": bhn_c,
        "m_attn": m_attn, "c_attn": c_attn,
        "w1": w1f, "b1": b1f,
        "w2": p["w2"].astype(jnp.bfloat16), "b2": p["b2"].astype(jnp.float32),
    }


# --------------------------------------------------------------------------- #
# Wrapper
# --------------------------------------------------------------------------- #
def _round_up(x, m):
    return ((x + m - 1) // m) * m


def _vmem_capacity_bytes():
    """Per-core VMEM capacity; conservative 64 MiB (v7x per-TC) fallback."""
    try:
        cap = getattr(pltpu.get_tpu_info(), "vmem_capacity_bytes", None)
        if cap:
            return int(cap)
    except Exception:
        pass
    return 64 * 1024 * 1024


def _vmem_footprint_bytes(bm, D):
    act = 2 * 2 * bm * D * 4                        # 2 streams x 2 pipeline buffers, f32
    gates = 2 * D * (6 * HIDDEN) * 2                # 2 fused bf16 gate-weight slabs (1 copy)
    small = (H2 * H2 + 2 * H2 * FC1_DIM + FC1_DIM * OUT_DIM) * 2 + 8 * 1024
    outb = 2 * bm * 128 * 4                         # output tile (lane-padded), 2 buffers
    return act + gates + small + outb


@functools.partial(jax.jit, static_argnames=("block_b", "single_buffer_weights"))
def forward(ocr, claim, kp, *, block_b=512, single_buffer_weights=True):
    B, D = ocr.shape

    # ---- batch tile selection (all trace-time Python ints) ------------------
    bm = min(block_b, _round_up(B, 8))              # multiple of 8 sublanes (f32 tiles)
    if B > 256 and _round_up(B, bm) // bm < 2:
        # Guarantee >= 2 batch tiles so the "parallel" axis feeds both v7x TCs.
        bm = _round_up((B + 1) // 2, 8)
    budget = int(0.72 * _vmem_capacity_bytes())     # headroom for scratch/semaphores
    while bm > 8 and _vmem_footprint_bytes(bm, D) > budget:
        bm = _round_up(bm // 2, 8)
    vmem_limit = max(32 << 20,
                     min(_vmem_footprint_bytes(bm, D) + (16 << 20), budget))

    Bp = _round_up(B, bm)
    if Bp != B:
        pad = ((0, Bp - B), (0, 0))                 # f32 pad only; no wrapper cast pass
        ocr = jnp.pad(ocr, pad)
        claim = jnp.pad(claim, pad)

    weights = (kp["wg_o"], kp["bg_o"], kp["bhn_o"],
               kp["wg_c"], kp["bg_c"], kp["bhn_c"],
               kp["m_attn"], kp["c_attn"],
               kp["w1"], kp["b1"],
               kp["w2"], kp["b2"])

    act_spec = pl.BlockSpec((bm, D), lambda i: (i, 0))
    # Weights: full-array block, constant index_map -> DMA'd once, VMEM-resident.
    if single_buffer_weights:
        w_specs = [pl.BlockSpec(w.shape, lambda i: (0, 0), pipeline_mode=pl.Buffered(1))
                   for w in weights]
    else:
        w_specs = [pl.BlockSpec(w.shape, lambda i: (0, 0)) for w in weights]

    out = pl.pallas_call(
        bigru_mha_kernel,
        out_shape=jax.ShapeDtypeStruct((Bp, OUT_DIM), jnp.float32),
        grid=(Bp // bm,),
        in_specs=[act_spec, act_spec] + w_specs,
        out_specs=pl.BlockSpec((bm, OUT_DIM), lambda i: (i, 0)),
        compiler_params=pltpu.CompilerParams(
            dimension_semantics=("parallel",),      # megacore-shard batch tiles on v7x
            vmem_limit_bytes=int(vmem_limit),
        ),
    )(ocr, claim, *weights)
    return out[:B]


# --------------------------------------------------------------------------- #
# Pure-JAX reference (f32 master params) for numerical sanity
# --------------------------------------------------------------------------- #
def reference(ocr, claim, p):
    def step(x, pset):
        w, bi, bh = pset
        r = jax.nn.sigmoid(x @ w[0] + bi[0] + bh[0])
        z = jax.nn.sigmoid(x @ w[1] + bi[1] + bh[1])
        n = jnp.tanh(x @ w[2] + bi[2] + r * bh[2])
        return (1.0 - z) * n

    def bigru(x, pf, pb):
        return jnp.concatenate([step(x, pf), step(x, pb)], axis=1)

    def attn(x):
        v = x @ p["wv"] + p["bv"]
        return v @ p["wo"] + p["bo"]

    go = bigru(ocr, p["gru_ocr_f"], p["gru_ocr_b"])
    gc = bigru(claim, p["gru_claim_f"], p["gru_claim_b"])
    comb = jnp.concatenate([attn(go), attn(gc)], axis=1)
    x = comb @ p["w1"] + p["b1"]
    scale = p["bn_gamma"] / jnp.sqrt(p["bn_var"] + BN_EPS)
    shift = p["bn_beta"] - p["bn_mean"] * scale
    x = x * scale + shift
    x = jnp.maximum(x, 0.0)
    return x @ p["w2"] + p["b2"]


if __name__ == "__main__":
    B, INPUT_DIM = 8, 256   # small stand-in for the TF-IDF feature dimension
    key = jax.random.PRNGKey(0)
    kp_key, ko, kc = jax.random.split(key, 3)

    master = init_params(kp_key, INPUT_DIM, HIDDEN, OUT_DIM)
    kparams = prepare_params(master)
    ocr = jax.random.normal(ko, (B, INPUT_DIM), dtype=jnp.float32)
    claim = jax.random.normal(kc, (B, INPUT_DIM), dtype=jnp.float32)

    try:
        out = forward(ocr, claim, kparams)
        out = jax.block_until_ready(out)
    except Exception:
        # Fallback if this Pallas build rejects single-buffered (Buffered(1)) specs.
        out = forward(ocr, claim, kparams, single_buffer_weights=False)
        out = jax.block_until_ready(out)

    ref = reference(ocr, claim, master)
    assert out.shape == (B, OUT_DIM), out.shape
    if not jnp.allclose(out, ref, atol=2e-2, rtol=2e-2):
        raise AssertionError(
            f"Pallas kernel mismatch vs reference; max abs diff "
            f"{float(jnp.max(jnp.abs(out - ref)))}")
    print("KERNEL_OK")
</pallas_src>

<mosaic_0001>
module attributes {stable_mosaic.version = 11 : i64} {
  func.func @bigru_mha_kernel(%arg0: i32, %arg1: memref<8x256xf32, #tpu.memory_space<vmem>>, %arg2: memref<8x256xf32, #tpu.memory_space<vmem>>, %arg3: memref<256x384xbf16, #tpu.memory_space<vmem>>, %arg4: memref<1x384xf32, #tpu.memory_space<vmem>>, %arg5: memref<1x128xf32, #tpu.memory_space<vmem>>, %arg6: memref<256x384xbf16, #tpu.memory_space<vmem>>, %arg7: memref<1x384xf32, #tpu.memory_space<vmem>>, %arg8: memref<1x128xf32, #tpu.memory_space<vmem>>, %arg9: memref<128x128xbf16, #tpu.memory_space<vmem>>, %arg10: memref<1x128xf32, #tpu.memory_space<vmem>>, %arg11: memref<256x128xbf16, #tpu.memory_space<vmem>>, %arg12: memref<1x128xf32, #tpu.memory_space<vmem>>, %arg13: memref<128x2xbf16, #tpu.memory_space<vmem>>, %arg14: memref<1x2xf32, #tpu.memory_space<vmem>>, %arg15: memref<8x2xf32, #tpu.memory_space<vmem>>) attributes {dimension_semantics = [#tpu.dimension_semantics<parallel>], iteration_bounds = array<i64: 1>, scalar_prefetch = 0 : i64, scratch_operands = 0 : i64, tpu.core_type = #tpu.core_type<tc>, window_params = [{transform_indices = @transform_0, window_bounds = array<i64: 8, 256>}, {transform_indices = @transform_1, window_bounds = array<i64: 8, 256>}, {pipeline_mode = #tpu.pipeline_mode<synchronous>, transform_indices = @transform_2, window_bounds = array<i64: 256, 384>}, {pipeline_mode = #tpu.pipeline_mode<synchronous>, transform_indices = @transform_3, window_bounds = array<i64: 1, 384>}, {pipeline_mode = #tpu.pipeline_mode<synchronous>, transform_indices = @transform_4, window_bounds = array<i64: 1, 128>}, {pipeline_mode = #tpu.pipeline_mode<synchronous>, transform_indices = @transform_5, window_bounds = array<i64: 256, 384>}, {pipeline_mode = #tpu.pipeline_mode<synchronous>, transform_indices = @transform_6, window_bounds = array<i64: 1, 384>}, {pipeline_mode = #tpu.pipeline_mode<synchronous>, transform_indices = @transform_7, window_bounds = array<i64: 1, 128>}, {pipeline_mode = #tpu.pipeline_mode<synchronous>, transform_indices = @transform_8, window_bounds = array<i64: 128, 128>}, {pipeline_mode = #tpu.pipeline_mode<synchronous>, transform_indices = @transform_9, window_bounds = array<i64: 1, 128>}, {pipeline_mode = #tpu.pipeline_mode<synchronous>, transform_indices = @transform_10, window_bounds = array<i64: 256, 128>}, {pipeline_mode = #tpu.pipeline_mode<synchronous>, transform_indices = @transform_11, window_bounds = array<i64: 1, 128>}, {pipeline_mode = #tpu.pipeline_mode<synchronous>, transform_indices = @transform_12, window_bounds = array<i64: 128, 2>}, {pipeline_mode = #tpu.pipeline_mode<synchronous>, transform_indices = @transform_13, window_bounds = array<i64: 1, 2>}, {transform_indices = @transform_14, window_bounds = array<i64: 8, 2>}]} {
    %c0 = arith.constant 0 : index
    %c0_0 = arith.constant 0 : index
    %0 = vector.load %arg1[%c0, %c0_0] : memref<8x256xf32, #tpu.memory_space<vmem>>, vector<8x256xf32>
    %1 = arith.truncf %0 : vector<8x256xf32> to vector<8x256xbf16>
    %c0_1 = arith.constant 0 : index
    %c0_2 = arith.constant 0 : index
    %2 = vector.load %arg3[%c0_1, %c0_2] : memref<256x384xbf16, #tpu.memory_space<vmem>>, vector<256x384xbf16>
    %cst = arith.constant dense<0.000000e+00> : vector<8x384xf32>
    %3 = tpu.matmul %1, %2, %cst {dimension_numbers = #tpu.dot_dimension_numbers<[1], [0], [0], [1], [0, 0, 1, 1], [], []>} : vector<8x256xbf16>, vector<256x384xbf16>, vector<8x384xf32> -> vector<8x384xf32>
    %c0_3 = arith.constant 0 : index
    %c0_4 = arith.constant 0 : index
    %4 = vector.load %arg4[%c0_3, %c0_4] : memref<1x384xf32, #tpu.memory_space<vmem>>, vector<1x384xf32>
    %5 = vector.broadcast %4 : vector<1x384xf32> to vector<8x384xf32>
    %6 = arith.addf %3, %5 : vector<8x384xf32>
    %7 = vector.extract_strided_slice %6 {offsets = [0, 0], sizes = [8, 128], strides = [1, 1]} : vector<8x384xf32> to vector<8x128xf32>
    %8 = arith.negf %7 : vector<8x128xf32>
    %9 = math.exp %8 : vector<8x128xf32>
    %cst_5 = arith.constant 1.000000e+00 : f32
    %10 = vector.broadcast %cst_5 : f32 to vector<8x128xf32>
    %11 = arith.addf %10, %9 : vector<8x128xf32>
    %12 = arith.divf %10, %11 : vector<8x128xf32>
    %13 = vector.extract_strided_slice %6 {offsets = [0, 128], sizes = [8, 128], strides = [1, 1]} : vector<8x384xf32> to vector<8x128xf32>
    %14 = arith.negf %13 : vector<8x128xf32>
    %15 = math.exp %14 : vector<8x128xf32>
    %cst_6 = arith.constant 1.000000e+00 : f32
    %16 = vector.broadcast %cst_6 : f32 to vector<8x128xf32>
    %17 = arith.addf %16, %15 : vector<8x128xf32>
    %18 = arith.divf %16, %17 : vector<8x128xf32>
    %19 = vector.extract_strided_slice %6 {offsets = [0, 256], sizes = [8, 128], strides = [1, 1]} : vector<8x384xf32> to vector<8x128xf32>
    %c0_7 = arith.constant 0 : index
    %c0_8 = arith.constant 0 : index
    %20 = vector.load %arg5[%c0_7, %c0_8] : memref<1x128xf32, #tpu.memory_space<vmem>>, vector<1x128xf32>
    %21 = vector.broadcast %20 : vector<1x128xf32> to vector<8x128xf32>
    %22 = arith.mulf %12, %21 : vector<8x128xf32>
    %23 = arith.addf %19, %22 : vector<8x128xf32>
    %24 = math.tanh %23 : vector<8x128xf32>
    %cst_9 = arith.constant 1.000000e+00 : f32
    %25 = vector.broadcast %cst_9 : f32 to vector<8x128xf32>
    %26 = arith.subf %25, %18 : vector<8x128xf32>
    %27 = arith.mulf %26, %24 : vector<8x128xf32>
    %c0_10 = arith.constant 0 : index
    %c0_11 = arith.constant 0 : index
    %28 = vector.load %arg2[%c0_10, %c0_11] : memref<8x256xf32, #tpu.memory_space<vmem>>, vector<8x256xf32>
    %29 = arith.truncf %28 : vector<8x256xf32> to vector<8x256xbf16>
    %c0_12 = arith.constant 0 : index
    %c0_13 = arith.constant 0 : index
    %30 = vector.load %arg6[%c0_12, %c0_13] : memref<256x384xbf16, #tpu.memory_space<vmem>>, vector<256x384xbf16>
    %cst_14 = arith.constant dense<0.000000e+00> : vector<8x384xf32>
    %31 = tpu.matmul %29, %30, %cst_14 {dimension_numbers = #tpu.dot_dimension_numbers<[1], [0], [0], [1], [0, 0, 1, 1], [], []>} : vector<8x256xbf16>, vector<256x384xbf16>, vector<8x384xf32> -> vector<8x384xf32>
    %c0_15 = arith.constant 0 : index
    %c0_16 = arith.constant 0 : index
    %32 = vector.load %arg7[%c0_15, %c0_16] : memref<1x384xf32, #tpu.memory_space<vmem>>, vector<1x384xf32>
    %33 = vector.broadcast %32 : vector<1x384xf32> to vector<8x384xf32>
    %34 = arith.addf %31, %33 : vector<8x384xf32>
    %35 = vector.extract_strided_slice %34 {offsets = [0, 0], sizes = [8, 128], strides = [1, 1]} : vector<8x384xf32> to vector<8x128xf32>
    %36 = arith.negf %35 : vector<8x128xf32>
    %37 = math.exp %36 : vector<8x128xf32>
    %cst_17 = arith.constant 1.000000e+00 : f32
    %38 = vector.broadcast %cst_17 : f32 to vector<8x128xf32>
    %39 = arith.addf %38, %37 : vector<8x128xf32>
    %40 = arith.divf %38, %39 : vector<8x128xf32>
    %41 = vector.extract_strided_slice %34 {offsets = [0, 128], sizes = [8, 128], strides = [1, 1]} : vector<8x384xf32> to vector<8x128xf32>
    %42 = arith.negf %41 : vector<8x128xf32>
    %43 = math.exp %42 : vector<8x128xf32>
    %cst_18 = arith.constant 1.000000e+00 : f32
    %44 = vector.broadcast %cst_18 : f32 to vector<8x128xf32>
    %45 = arith.addf %44, %43 : vector<8x128xf32>
    %46 = arith.divf %44, %45 : vector<8x128xf32>
    %47 = vector.extract_strided_slice %34 {offsets = [0, 256], sizes = [8, 128], strides = [1, 1]} : vector<8x384xf32> to vector<8x128xf32>
    %c0_19 = arith.constant 0 : index
    %c0_20 = arith.constant 0 : index
    %48 = vector.load %arg8[%c0_19, %c0_20] : memref<1x128xf32, #tpu.memory_space<vmem>>, vector<1x128xf32>
    %49 = vector.broadcast %48 : vector<1x128xf32> to vector<8x128xf32>
    %50 = arith.mulf %40, %49 : vector<8x128xf32>
    %51 = arith.addf %47, %50 : vector<8x128xf32>
    %52 = math.tanh %51 : vector<8x128xf32>
    %cst_21 = arith.constant 1.000000e+00 : f32
    %53 = vector.broadcast %cst_21 : f32 to vector<8x128xf32>
    %54 = arith.subf %53, %46 : vector<8x128xf32>
    %55 = arith.mulf %54, %52 : vector<8x128xf32>
    %56 = tpu.concatenate %27, %55 in 0 : vector<8x128xf32>, vector<8x128xf32> -> vector<16x128xf32>
    %57 = arith.truncf %56 : vector<16x128xf32> to vector<16x128xbf16>
    %c0_22 = arith.constant 0 : index
    %c0_23 = arith.constant 0 : index
    %58 = vector.load %arg9[%c0_22, %c0_23] : memref<128x128xbf16, #tpu.memory_space<vmem>>, vector<128x128xbf16>
    %cst_24 = arith.constant dense<0.000000e+00> : vector<16x128xf32>
    %59 = tpu.matmul %57, %58, %cst_24 {dimension_numbers = #tpu.dot_dimension_numbers<[1], [0], [0], [1], [0, 0, 1, 1], [], []>} : vector<16x128xbf16>, vector<128x128xbf16>, vector<16x128xf32> -> vector<16x128xf32>
    %c0_25 = arith.constant 0 : index
    %c0_26 = arith.constant 0 : index
    %60 = vector.load %arg10[%c0_25, %c0_26] : memref<1x128xf32, #tpu.memory_space<vmem>>, vector<1x128xf32>
    %61 = vector.broadcast %60 : vector<1x128xf32> to vector<16x128xf32>
    %62 = arith.addf %59, %61 : vector<16x128xf32>
    %63 = vector.extract_strided_slice %62 {offsets = [0, 0], sizes = [8, 128], strides = [1, 1]} : vector<16x128xf32> to vector<8x128xf32>
    %64 = vector.extract_strided_slice %62 {offsets = [8, 0], sizes = [8, 128], strides = [1, 1]} : vector<16x128xf32> to vector<8x128xf32>
    %65 = tpu.concatenate %63, %64 in 1 : vector<8x128xf32>, vector<8x128xf32> -> vector<8x256xf32>
    %66 = arith.truncf %65 : vector<8x256xf32> to vector<8x256xbf16>
    %c0_27 = arith.constant 0 : index
    %c0_28 = arith.constant 0 : index
    %67 = vector.load %arg11[%c0_27, %c0_28] : memref<256x128xbf16, #tpu.memory_space<vmem>>, vector<256x128xbf16>
    %cst_29 = arith.constant dense<0.000000e+00> : vector<8x128xf32>
    %68 = tpu.matmul %66, %67, %cst_29 {dimension_numbers = #tpu.dot_dimension_numbers<[1], [0], [0], [1], [0, 0, 1, 1], [], []>} : vector<8x256xbf16>, vector<256x128xbf16>, vector<8x128xf32> -> vector<8x128xf32>
    %c0_30 = arith.constant 0 : index
    %c0_31 = arith.constant 0 : index
    %69 = vector.load %arg12[%c0_30, %c0_31] : memref<1x128xf32, #tpu.memory_space<vmem>>, vector<1x128xf32>
    %70 = vector.broadcast %69 : vector<1x128xf32> to vector<8x128xf32>
    %71 = arith.addf %68, %70 : vector<8x128xf32>
    %cst_32 = arith.constant 0.000000e+00 : f32
    %72 = vector.broadcast %cst_32 : f32 to vector<8x128xf32>
    %73 = arith.maximumf %71, %72 : vector<8x128xf32>
    %74 = arith.truncf %73 : vector<8x128xf32> to vector<8x128xbf16>
    %c0_33 = arith.constant 0 : index
    %c0_34 = arith.constant 0 : index
    %75 = vector.load %arg13[%c0_33, %c0_34] : memref<128x2xbf16, #tpu.memory_space<vmem>>, vector<128x2xbf16>
    %cst_35 = arith.constant dense<0.000000e+00> : vector<8x2xf32>
    %76 = tpu.matmul %74, %75, %cst_35 {dimension_numbers = #tpu.dot_dimension_numbers<[1], [0], [0], [1], [0, 0, 1, 1], [], []>} : vector<8x128xbf16>, vector<128x2xbf16>, vector<8x2xf32> -> vector<8x2xf32>
    %c0_36 = arith.constant 0 : index
    %c0_37 = arith.constant 0 : index
    %77 = vector.load %arg14[%c0_36, %c0_37] : memref<1x2xf32, #tpu.memory_space<vmem>>, vector<1x2xf32>
    %78 = vector.broadcast %77 : vector<1x2xf32> to vector<8x2xf32>
    %79 = arith.addf %76, %78 : vector<8x2xf32>
    %c0_38 = arith.constant 0 : index
    %c0_39 = arith.constant 0 : index
    %80 = vector.load %arg15[%c0_38, %c0_39] : memref<8x2xf32, #tpu.memory_space<vmem>>, vector<8x2xf32>
    tpu.vector_store %arg15[%c0_38, %c0_39], %79 {strides = array<i32>} : memref<8x2xf32, #tpu.memory_space<vmem>>, vector<8x2xf32>,
    return
  }
  func.func @transform_0(%arg0: i32) -> (i32, i32) {
    %c0_i32 = arith.constant 0 : i32
    %c0_i32_0 = arith.constant 0 : i32
    return %arg0, %c0_i32 : i32, i32
  }
  func.func @transform_1(%arg0: i32) -> (i32, i32) {
    %c0_i32 = arith.constant 0 : i32
    %c0_i32_0 = arith.constant 0 : i32
    return %arg0, %c0_i32 : i32, i32
  }
  func.func @transform_2(%arg0: i32) -> (i32, i32) {
    %c0_i32 = arith.constant 0 : i32
    %c0_i32_0 = arith.constant 0 : i32
    %c0_i32_1 = arith.constant 0 : i32
    return %c0_i32, %c0_i32_0 : i32, i32
  }
  func.func @transform_3(%arg0: i32) -> (i32, i32) {
    %c0_i32 = arith.constant 0 : i32
    %c0_i32_0 = arith.constant 0 : i32
    %c0_i32_1 = arith.constant 0 : i32
    return %c0_i32, %c0_i32_0 : i32, i32
  }
  func.func @transform_4(%arg0: i32) -> (i32, i32) {
    %c0_i32 = arith.constant 0 : i32
    %c0_i32_0 = arith.constant 0 : i32
    %c0_i32_1 = arith.constant 0 : i32
    return %c0_i32, %c0_i32_0 : i32, i32
  }
  func.func @transform_5(%arg0: i32) -> (i32, i32) {
    %c0_i32 = arith.constant 0 : i32
    %c0_i32_0 = arith.constant 0 : i32
    %c0_i32_1 = arith.constant 0 : i32
    return %c0_i32, %c0_i32_0 : i32, i32
  }
  func.func @transform_6(%arg0: i32) -> (i32, i32) {
    %c0_i32 = arith.constant 0 : i32
    %c0_i32_0 = arith.constant 0 : i32
    %c0_i32_1 = arith.constant 0 : i32
    return %c0_i32, %c0_i32_0 : i32, i32
  }
  func.func @transform_7(%arg0: i32) -> (i32, i32) {
    %c0_i32 = arith.constant 0 : i32
    %c0_i32_0 = arith.constant 0 : i32
    %c0_i32_1 = arith.constant 0 : i32
    return %c0_i32, %c0_i32_0 : i32, i32
  }
  func.func @transform_8(%arg0: i32) -> (i32, i32) {
    %c0_i32 = arith.constant 0 : i32
    %c0_i32_0 = arith.constant 0 : i32
    %c0_i32_1 = arith.constant 0 : i32
    return %c0_i32, %c0_i32_0 : i32, i32
  }
  func.func @transform_9(%arg0: i32) -> (i32, i32) {
    %c0_i32 = arith.constant 0 : i32
    %c0_i32_0 = arith.constant 0 : i32
    %c0_i32_1 = arith.constant 0 : i32
    return %c0_i32, %c0_i32_0 : i32, i32
  }
  func.func @transform_10(%arg0: i32) -> (i32, i32) {
    %c0_i32 = arith.constant 0 : i32
    %c0_i32_0 = arith.constant 0 : i32
    %c0_i32_1 = arith.constant 0 : i32
    return %c0_i32, %c0_i32_0 : i32, i32
  }
  func.func @transform_11(%arg0: i32) -> (i32, i32) {
    %c0_i32 = arith.constant 0 : i32
    %c0_i32_0 = arith.constant 0 : i32
    %c0_i32_1 = arith.constant 0 : i32
    return %c0_i32, %c0_i32_0 : i32, i32
  }
  func.func @transform_12(%arg0: i32) -> (i32, i32) {
    %c0_i32 = arith.constant 0 : i32
    %c0_i32_0 = arith.constant 0 : i32
    %c0_i32_1 = arith.constant 0 : i32
    return %c0_i32, %c0_i32_0 : i32, i32
  }
  func.func @transform_13(%arg0: i32) -> (i32, i32) {
    %c0_i32 = arith.constant 0 : i32
    %c0_i32_0 = arith.constant 0 : i32
    %c0_i32_1 = arith.constant 0 : i32
    return %c0_i32, %c0_i32_0 : i32, i32
  }
  func.func @transform_14(%arg0: i32) -> (i32, i32) {
    %c0_i32 = arith.constant 0 : i32
    %c0_i32_0 = arith.constant 0 : i32
    return %arg0, %c0_i32 : i32, i32
  }
}

module attributes {stable_mosaic.version = 11 : i64} {
  func.func @bigru_mha_kernel(%arg0: i32, %arg1: memref<8x256xf32, #tpu.memory_space<vmem>>, %arg2: memref<8x256xf32, #tpu.memory_space<vmem>>, %arg3: memref<256x384xbf16, #tpu.memory_space<vmem>>, %arg4: memref<1x384xf32, #tpu.memory_space<vmem>>, %arg5: memref<1x128xf32, #tpu.memory_space<vmem>>, %arg6: memref<256x384xbf16, #tpu.memory_space<vmem>>, %arg7: memref<1x384xf32, #tpu.memory_space<vmem>>, %arg8: memref<1x128xf32, #tpu.memory_space<vmem>>, %arg9: memref<128x128xbf16, #tpu.memory_space<vmem>>, %arg10: memref<1x128xf32, #tpu.memory_space<vmem>>, %arg11: memref<256x128xbf16, #tpu.memory_space<vmem>>, %arg12: memref<1x128xf32, #tpu.memory_space<vmem>>, %arg13: memref<128x2xbf16, #tpu.memory_space<vmem>>, %arg14: memref<1x2xf32, #tpu.memory_space<vmem>>, %arg15: memref<8x2xf32, #tpu.memory_space<vmem>>) attributes {dimension_semantics = [#tpu.dimension_semantics<parallel>], iteration_bounds = array<i64: 1>, scalar_prefetch = 0 : i64, scratch_operands = 0 : i64, tpu.core_type = #tpu.core_type<tc>, window_params = [{transform_indices = @transform_0, window_bounds = array<i64: 8, 256>}, {transform_indices = @transform_1, window_bounds = array<i64: 8, 256>}, {pipeline_mode = #tpu.pipeline_mode<synchronous>, transform_indices = @transform_2, window_bounds = array<i64: 256, 384>}, {pipeline_mode = #tpu.pipeline_mode<synchronous>, transform_indices = @transform_3, window_bounds = array<i64: 1, 384>}, {pipeline_mode = #tpu.pipeline_mode<synchronous>, transform_indices = @transform_4, window_bounds = array<i64: 1, 128>}, {pipeline_mode = #tpu.pipeline_mode<synchronous>, transform_indices = @transform_5, window_bounds = array<i64: 256, 384>}, {pipeline_mode = #tpu.pipeline_mode<synchronous>, transform_indices = @transform_6, window_bounds = array<i64: 1, 384>}, {pipeline_mode = #tpu.pipeline_mode<synchronous>, transform_indices = @transform_7, window_bounds = array<i64: 1, 128>}, {pipeline_mode = #tpu.pipeline_mode<synchronous>, transform_indices = @transform_8, window_bounds = array<i64: 128, 128>}, {pipeline_mode = #tpu.pipeline_mode<synchronous>, transform_indices = @transform_9, window_bounds = array<i64: 1, 128>}, {pipeline_mode = #tpu.pipeline_mode<synchronous>, transform_indices = @transform_10, window_bounds = array<i64: 256, 128>}, {pipeline_mode = #tpu.pipeline_mode<synchronous>, transform_indices = @transform_11, window_bounds = array<i64: 1, 128>}, {pipeline_mode = #tpu.pipeline_mode<synchronous>, transform_indices = @transform_12, window_bounds = array<i64: 128, 2>}, {pipeline_mode = #tpu.pipeline_mode<synchronous>, transform_indices = @transform_13, window_bounds = array<i64: 1, 2>}, {transform_indices = @transform_14, window_bounds = array<i64: 8, 2>}]} {
    %c0 = arith.constant 0 : index
    %c0_0 = arith.constant 0 : index
    %0 = vector.load %arg1[%c0, %c0_0] : memref<8x256xf32, #tpu.memory_space<vmem>>, vector<8x256xf32>
    %1 = arith.truncf %0 : vector<8x256xf32> to vector<8x256xbf16>
    %c0_1 = arith.constant 0 : index
    %c0_2 = arith.constant 0 : index
    %2 = vector.load %arg3[%c0_1, %c0_2] : memref<256x384xbf16, #tpu.memory_space<vmem>>, vector<256x384xbf16>
    %cst = arith.constant dense<0.000000e+00> : vector<8x384xf32>
    %3 = tpu.matmul %1, %2, %cst {dimension_numbers = #tpu.dot_dimension_numbers<[1], [0], [0], [1], [0, 0, 1, 1], [], []>} : vector<8x256xbf16>, vector<256x384xbf16>, vector<8x384xf32> -> vector<8x384xf32>
    %c0_3 = arith.constant 0 : index
    %c0_4 = arith.constant 0 : index
    %4 = vector.load %arg4[%c0_3, %c0_4] : memref<1x384xf32, #tpu.memory_space<vmem>>, vector<1x384xf32>
    %5 = vector.broadcast %4 : vector<1x384xf32> to vector<8x384xf32>
    %6 = arith.addf %3, %5 : vector<8x384xf32>
    %7 = vector.extract_strided_slice %6 {offsets = [0, 0], sizes = [8, 128], strides = [1, 1]} : vector<8x384xf32> to vector<8x128xf32>
    %8 = arith.negf %7 : vector<8x128xf32>
    %9 = math.exp %8 : vector<8x128xf32>
    %cst_5 = arith.constant 1.000000e+00 : f32
    %10 = vector.broadcast %cst_5 : f32 to vector<8x128xf32>
    %11 = arith.addf %10, %9 : vector<8x128xf32>
    %12 = arith.divf %10, %11 : vector<8x128xf32>
    %13 = vector.extract_strided_slice %6 {offsets = [0, 128], sizes = [8, 128], strides = [1, 1]} : vector<8x384xf32> to vector<8x128xf32>
    %14 = arith.negf %13 : vector<8x128xf32>
    %15 = math.exp %14 : vector<8x128xf32>
    %cst_6 = arith.constant 1.000000e+00 : f32
    %16 = vector.broadcast %cst_6 : f32 to vector<8x128xf32>
    %17 = arith.addf %16, %15 : vector<8x128xf32>
    %18 = arith.divf %16, %17 : vector<8x128xf32>
    %19 = vector.extract_strided_slice %6 {offsets = [0, 256], sizes = [8, 128], strides = [1, 1]} : vector<8x384xf32> to vector<8x128xf32>
    %c0_7 = arith.constant 0 : index
    %c0_8 = arith.constant 0 : index
    %20 = vector.load %arg5[%c0_7, %c0_8] : memref<1x128xf32, #tpu.memory_space<vmem>>, vector<1x128xf32>
    %21 = vector.broadcast %20 : vector<1x128xf32> to vector<8x128xf32>
    %22 = arith.mulf %12, %21 : vector<8x128xf32>
    %23 = arith.addf %19, %22 : vector<8x128xf32>
    %24 = math.tanh %23 : vector<8x128xf32>
    %cst_9 = arith.constant 1.000000e+00 : f32
    %25 = vector.broadcast %cst_9 : f32 to vector<8x128xf32>
    %26 = arith.subf %25, %18 : vector<8x128xf32>
    %27 = arith.mulf %26, %24 : vector<8x128xf32>
    %c0_10 = arith.constant 0 : index
    %c0_11 = arith.constant 0 : index
    %28 = vector.load %arg2[%c0_10, %c0_11] : memref<8x256xf32, #tpu.memory_space<vmem>>, vector<8x256xf32>
    %29 = arith.truncf %28 : vector<8x256xf32> to vector<8x256xbf16>
    %c0_12 = arith.constant 0 : index
    %c0_13 = arith.constant 0 : index
    %30 = vector.load %arg6[%c0_12, %c0_13] : memref<256x384xbf16, #tpu.memory_space<vmem>>, vector<256x384xbf16>
    %cst_14 = arith.constant dense<0.000000e+00> : vector<8x384xf32>
    %31 = tpu.matmul %29, %30, %cst_14 {dimension_numbers = #tpu.dot_dimension_numbers<[1], [0], [0], [1], [0, 0, 1, 1], [], []>} : vector<8x256xbf16>, vector<256x384xbf16>, vector<8x384xf32> -> vector<8x384xf32>
    %c0_15 = arith.constant 0 : index
    %c0_16 = arith.constant 0 : index
    %32 = vector.load %arg7[%c0_15, %c0_16] : memref<1x384xf32, #tpu.memory_space<vmem>>, vector<1x384xf32>
    %33 = vector.broadcast %32 : vector<1x384xf32> to vector<8x384xf32>
    %34 = arith.addf %31, %33 : vector<8x384xf32>
    %35 = vector.extract_strided_slice %34 {offsets = [0, 0], sizes = [8, 128], strides = [1, 1]} : vector<8x384xf32> to vector<8x128xf32>
    %36 = arith.negf %35 : vector<8x128xf32>
    %37 = math.exp %36 : vector<8x128xf32>
    %cst_17 = arith.constant 1.000000e+00 : f32
    %38 = vector.broadcast %cst_17 : f32 to vector<8x128xf32>
    %39 = arith.addf %38, %37 : vector<8x128xf32>
    %40 = arith.divf %38, %39 : vector<8x128xf32>
    %41 = vector.extract_strided_slice %34 {offsets = [0, 128], sizes = [8, 128], strides = [1, 1]} : vector<8x384xf32> to vector<8x128xf32>
    %42 = arith.negf %41 : vector<8x128xf32>
    %43 = math.exp %42 : vector<8x128xf32>
    %cst_18 = arith.constant 1.000000e+00 : f32
    %44 = vector.broadcast %cst_18 : f32 to vector<8x128xf32>
    %45 = arith.addf %44, %43 : vector<8x128xf32>
    %46 = arith.divf %44, %45 : vector<8x128xf32>
    %47 = vector.extract_strided_slice %34 {offsets = [0, 256], sizes = [8, 128], strides = [1, 1]} : vector<8x384xf32> to vector<8x128xf32>
    %c0_19 = arith.constant 0 : index
    %c0_20 = arith.constant 0 : index
    %48 = vector.load %arg8[%c0_19, %c0_20] : memref<1x128xf32, #tpu.memory_space<vmem>>, vector<1x128xf32>
    %49 = vector.broadcast %48 : vector<1x128xf32> to vector<8x128xf32>
    %50 = arith.mulf %40, %49 : vector<8x128xf32>
    %51 = arith.addf %47, %50 : vector<8x128xf32>
    %52 = math.tanh %51 : vector<8x128xf32>
    %cst_21 = arith.constant 1.000000e+00 : f32
    %53 = vector.broadcast %cst_21 : f32 to vector<8x128xf32>
    %54 = arith.subf %53, %46 : vector<8x128xf32>
    %55 = arith.mulf %54, %52 : vector<8x128xf32>
    %56 = tpu.concatenate %27, %55 in 0 : vector<8x128xf32>, vector<8x128xf32> -> vector<16x128xf32>
    %57 = arith.truncf %56 : vector<16x128xf32> to vector<16x128xbf16>
    %c0_22 = arith.constant 0 : index
    %c0_23 = arith.constant 0 : index
    %58 = vector.load %arg9[%c0_22, %c0_23] : memref<128x128xbf16, #tpu.memory_space<vmem>>, vector<128x128xbf16>
    %cst_24 = arith.constant dense<0.000000e+00> : vector<16x128xf32>
    %59 = tpu.matmul %57, %58, %cst_24 {dimension_numbers = #tpu.dot_dimension_numbers<[1], [0], [0], [1], [0, 0, 1, 1], [], []>} : vector<16x128xbf16>, vector<128x128xbf16>, vector<16x128xf32> -> vector<16x128xf32>
    %c0_25 = arith.constant 0 : index
    %c0_26 = arith.constant 0 : index
    %60 = vector.load %arg10[%c0_25, %c0_26] : memref<1x128xf32, #tpu.memory_space<vmem>>, vector<1x128xf32>
    %61 = vector.broadcast %60 : vector<1x128xf32> to vector<16x128xf32>
    %62 = arith.addf %59, %61 : vector<16x128xf32>
    %63 = vector.extract_strided_slice %62 {offsets = [0, 0], sizes = [8, 128], strides = [1, 1]} : vector<16x128xf32> to vector<8x128xf32>
    %64 = vector.extract_strided_slice %62 {offsets = [8, 0], sizes = [8, 128], strides = [1, 1]} : vector<16x128xf32> to vector<8x128xf32>
    %65 = tpu.concatenate %63, %64 in 1 : vector<8x128xf32>, vector<8x128xf32> -> vector<8x256xf32>
    %66 = arith.truncf %65 : vector<8x256xf32> to vector<8x256xbf16>
    %c0_27 = arith.constant 0 : index
    %c0_28 = arith.constant 0 : index
    %67 = vector.load %arg11[%c0_27, %c0_28] : memref<256x128xbf16, #tpu.memory_space<vmem>>, vector<256x128xbf16>
    %cst_29 = arith.constant dense<0.000000e+00> : vector<8x128xf32>
    %68 = tpu.matmul %66, %67, %cst_29 {dimension_numbers = #tpu.dot_dimension_numbers<[1], [0], [0], [1], [0, 0, 1, 1], [], []>} : vector<8x256xbf16>, vector<256x128xbf16>, vector<8x128xf32> -> vector<8x128xf32>
    %c0_30 = arith.constant 0 : index
    %c0_31 = arith.constant 0 : index
    %69 = vector.load %arg12[%c0_30, %c0_31] : memref<1x128xf32, #tpu.memory_space<vmem>>, vector<1x128xf32>
    %70 = vector.broadcast %69 : vector<1x128xf32> to vector<8x128xf32>
    %71 = arith.addf %68, %70 : vector<8x128xf32>
    %cst_32 = arith.constant 0.000000e+00 : f32
    %72 = vector.broadcast %cst_32 : f32 to vector<8x128xf32>
    %73 = arith.maximumf %71, %72 : vector<8x128xf32>
    %74 = arith.truncf %73 : vector<8x128xf32> to vector<8x128xbf16>
    %c0_33 = arith.constant 0 : index
    %c0_34 = arith.constant 0 : index
    %75 = vector.load %arg13[%c0_33, %c0_34] : memref<128x2xbf16, #tpu.memory_space<vmem>>, vector<128x2xbf16>
    %cst_35 = arith.constant dense<0.000000e+00> : vector<8x2xf32>
    %76 = tpu.matmul %74, %75, %cst_35 {dimension_numbers = #tpu.dot_dimension_numbers<[1], [0], [0], [1], [0, 0, 1, 1], [], []>} : vector<8x128xbf16>, vector<128x2xbf16>, vector<8x2xf32> -> vector<8x2xf32>
    %c0_36 = arith.constant 0 : index
    %c0_37 = arith.constant 0 : index
    %77 = vector.load %arg14[%c0_36, %c0_37] : memref<1x2xf32, #tpu.memory_space<vmem>>, vector<1x2xf32>
    %78 = vector.broadcast %77 : vector<1x2xf32> to vector<8x2xf32>
    %79 = arith.addf %76, %78 : vector<8x2xf32>
    %c0_38 = arith.constant 0 : index
    %c0_39 = arith.constant 0 : index
    %80 = vector.load %arg15[%c0_38, %c0_39] : memref<8x2xf32, #tpu.memory_space<vmem>>, vector<8x2xf32>
    tpu.vector_store %arg15[%c0_38, %c0_39], %79 {strides = array<i32>} : memref<8x2xf32, #tpu.memory_space<vmem>>, vector<8x2xf32>,
    return
  }
  func.func @transform_0(%arg0: i32) -> (i32, i32) {
    %c0_i32 = arith.constant 0 : i32
    %c0_i32_0 = arith.constant 0 : i32
    return %arg0, %c0_i32 : i32, i32
  }
  func.func @transform_1(%arg0: i32) -> (i32, i32) {
    %c0_i32 = arith.constant 0 : i32
    %c0_i32_0 = arith.constant 0 : i32
    return %arg0, %c0_i32 : i32, i32
  }
  func.func @transform_2(%arg0: i32) -> (i32, i32) {
    %c0_i32 = arith.constant 0 : i32
    %c0_i32_0 = arith.constant 0 : i32
    %c0_i32_1 = arith.constant 0 : i32
    return %c0_i32, %c0_i32_0 : i32, i32
  }
  func.func @transform_3(%arg0: i32) -> (i32, i32) {
    %c0_i32 = arith.constant 0 : i32
    %c0_i32_0 = arith.constant 0 : i32
    %c0_i32_1 = arith.constant 0 : i32
    return %c0_i32, %c0_i32_0 : i32, i32
  }
  func.func @transform_4(%arg0: i32) -> (i32, i32) {
    %c0_i32 = arith.constant 0 : i32
    %c0_i32_0 = arith.constant 0 : i32
    %c0_i32_1 = arith.constant 0 : i32
    return %c0_i32, %c0_i32_0 : i32, i32
  }
  func.func @transform_5(%arg0: i32) -> (i32, i32) {
    %c0_i32 = arith.constant 0 : i32
    %c0_i32_0 = arith.constant 0 : i32
    %c0_i32_1 = arith.constant 0 : i32
    return %c0_i32, %c0_i32_0 : i32, i32
  }
  func.func @transform_6(%arg0: i32) -> (i32, i32) {
    %c0_i32 = arith.constant 0 : i32
    %c0_i32_0 = arith.constant 0 : i32
    %c0_i32_1 = arith.constant 0 : i32
    return %c0_i32, %c0_i32_0 : i32, i32
  }
  func.func @transform_7(%arg0: i32) -> (i32, i32) {
    %c0_i32 = arith.constant 0 : i32
    %c0_i32_0 = arith.constant 0 : i32
    %c0_i32_1 = arith.constant 0 : i32
    return %c0_i32, %c0_i32_0 : i32, i32
  }
  func.func @transform_8(%arg0: i32) -> (i32, i32) {
    %c0_i32 = arith.constant 0 : i32
    %c0_i32_0 = arith.constant 0 : i32
    %c0_i32_1 = arith.constant 0 : i32
    return %c0_i32, %c0_i32_0 : i32, i32
  }
  func.func @transform_9(%arg0: i32) -> (i32, i32) {
    %c0_i32 = arith.constant 0 : i32
    %c0_i32_0 = arith.constant 0 : i32
    %c0_i32_1 = arith.constant 0 : i32
    return %c0_i32, %c0_i32_0 : i32, i32
  }
  func.func @transform_10(%arg0: i32) -> (i32, i32) {
    %c0_i32 = arith.constant 0 : i32
    %c0_i32_0 = arith.constant 0 : i32
    %c0_i32_1 = arith.constant 0 : i32
    return %c0_i32, %c0_i32_0 : i32, i32
  }
  func.func @transform_11(%arg0: i32) -> (i32, i32) {
    %c0_i32 = arith.constant 0 : i32
    %c0_i32_0 = arith.constant 0 : i32
    %c0_i32_1 = arith.constant 0 : i32
    return %c0_i32, %c0_i32_0 : i32, i32
  }
  func.func @transform_12(%arg0: i32) -> (i32, i32) {
    %c0_i32 = arith.constant 0 : i32
    %c0_i32_0 = arith.constant 0 : i32
    %c0_i32_1 = arith.constant 0 : i32
    return %c0_i32, %c0_i32_0 : i32, i32
  }
  func.func @transform_13(%arg0: i32) -> (i32, i32) {
    %c0_i32 = arith.constant 0 : i32
    %c0_i32_0 = arith.constant 0 : i32
    %c0_i32_1 = arith.constant 0 : i32
    return %c0_i32, %c0_i32_0 : i32, i32
  }
  func.func @transform_14(%arg0: i32) -> (i32, i32) {
    %c0_i32 = arith.constant 0 : i32
    %c0_i32_0 = arith.constant 0 : i32
    return %arg0, %c0_i32 : i32, i32
  }
}

</mosaic_0001>

<bundles_post_ra>
// kernel: forward.1
= control target key start
LH: loop header
LB: loop body
LE: loop exit
PB: predicated region body
PF: predicated region fallthrough
CT: control target
= control target key end

     0   :  { %19 = vsyncpa [#allocation3], 0  ;;  %s2354_s0 = inlined_call_operand.vmem [shape: f32[8,256], index: 0, kind: input, shape index: {}]   ;;  %s2355_s1 = inlined_call_operand.hbm [shape: f32[8,256], index: 1, kind: input, shape index: {}]   ;;  %s2356_s2 = inlined_call_operand.hbm [shape: bf16[256,384], index: 2, kind: input, shape index: {}]   ;;  %s2357_s3 = inlined_call_operand.hbm [shape: f32[1,384], index: 3, kind: input, shape index: {}]   ;;  %s2358_s4 = inlined_call_operand.vmem [shape: f32[1,128], index: 4, kind: input, shape index: {}]   ;;  %s2359_s5 = inlined_call_operand.hbm [shape: bf16[256,384], index: 5, kind: input, shape index: {}]   ;;  %s2360_s6 = inlined_call_operand.hbm [shape: f32[1,384], index: 6, kind: input, shape index: {}]   ;;  %s2361_s7 = inlined_call_operand.hbm [shape: f32[1,128], index: 7, kind: input, shape index: {}]   ;;  %s2362_s8 = inlined_call_operand.vmem [shape: bf16[128,128], index: 8, kind: input, shape index: {}]   ;;  %s2363_s9 = inlined_call_operand.hbm [shape: f32[1,128], index: 9, kind: input, shape index: {}]   ;;  %s2364_s10 = inlined_call_operand.hbm [shape: bf16[256,128], index: 10, kind: input, shape index: {}]   ;;  %s2365_s11 = inlined_call_operand.hbm [shape: f32[1,128], index: 11, kind: input, shape index: {}]   ;;  %s2366_s12 = inlined_call_operand.vmem [shape: bf16[128,2], index: 12, kind: input, shape index: {}]   ;;  %s2367_s13 = inlined_call_operand.hbm [shape: f32[1,2], index: 13, kind: input, shape index: {}]   ;;  %s2368_s14 = inlined_call_operand.vmem [shape: f32[8,2], index: 14, kind: output, shape index: {}]  }
   0x1   :  { %20 = vsyncpa [#allocation5], 0 }
   0x2   :  { %21 = vsyncpa [#allocation8], 0 }
   0x3   :  { %22 = vsyncpa [#allocation11], 0 }
   0x4   :  { %23 = vsyncpa [#allocation14], 0 }
   0x5   :  { %24 = vsyncpa [#allocation17], 0  ;;  %s2146_s29 = smov [#allocation4]  }
   0x6   :  { %s42_s30 = sshll.u32 %s2146_s29, 4  ;;  %s43_s30 = int_to_ptr.vmem [resolvable:$true] %s42_s30 }
   0x7   :  { %s1942_s15 = scalar_lea.vmem %s43_s30, 6144  ;;  %p1947_p1 = scmp.lt.s32.totalorder %s43_s30, %s43_s30 }
   0x8   :  { %p1943_p0 = scmp.ne.s32.totalorder %s43_s30, %s1942_s15  ;;  %p1948_p2 = scmp.lt.s32.totalorder %s1942_s15, %s1942_s15 }
   0xa   :  { %p1949_p3 = por %p1948_p2, %p1947_p1 }
   0xc   :  { %p1950_p4 = pnand %p1949_p3, %p1943_p0 }
   0xe   :  { %1953 = shalt.err (!%p1950_p4)
}
   0xf   :  { %s2147_s16 = smov 192   ;;  %s2148_s17 = smov 12  }
  0x10   :  { %48 = dma.hbm_to_vmem [thread:$0]  %s2356_s2, 6144, %s43_s30, [#allocation5], %s2147_s16, %s2147_s16, %s2148_s17  }
  0x11   :  { %s2149_s20 = smov [#allocation7]   ;;  %s2150_s22 = smov [#allocation10]  }
  0x12   :  { %s66_s21 = sshll.u32 %s2149_s20, 4  ;;  %s89_s23 = sshll.u32 %s2150_s22, 4  ;;  %s67_s21 = int_to_ptr.vmem [resolvable:$true] %s66_s21  ;;  %s90_s23 = int_to_ptr.vmem [resolvable:$true] %s89_s23 }
  0x13   :  { %s1962_s24 = scalar_lea.vmem %s67_s21, 6144  ;;  %p1967_p6 = scmp.lt.s32.totalorder %s67_s21, %s67_s21 }
  0x14   :  { %p1963_p5 = scmp.ne.s32.totalorder %s67_s21, %s1962_s24  ;;  %p1968_p7 = scmp.lt.s32.totalorder %s1962_s24, %s1962_s24 }
  0x16   :  { %p1969_p8 = por %p1968_p7, %p1967_p6 }
  0x18   :  { %p1970_p9 = pnand %p1969_p8, %p1963_p5 }
  0x1a   :  { %1973 = shalt.err (!%p1970_p9)
}
  0x1b   :  { %72 = dma.hbm_to_vmem [thread:$0]  %s2359_s5, 6144, %s67_s21, [#allocation8], %s2147_s16, %s2147_s16, %s2148_s17  }
  0x1c   :  { %s1982_s27 = scalar_lea.vmem %s90_s23, 16  ;;  %s1986_s2 = scalar_lea.vmem %s90_s23, 32 }
  0x1d   :  { %p1983_p10 = scmp.ne.s32.totalorder %s90_s23, %s1982_s27  ;;  %p1987_p11 = scmp.lt.s32.totalorder %s90_s23, %s90_s23 }
  0x1e   :  { %p1988_p12 = scmp.lt.s32.totalorder %s1986_s2, %s1982_s27 }
  0x20   :  { %p1989_p13 = por %p1988_p12, %p1987_p11 }
  0x22   :  { %p1990_p0 = pnand %p1989_p13, %p1983_p10 }
  0x24   :  { %1993 = shalt.err (!%p1990_p0)
}
  0x25   :  { %92 = dma.hbm_to_vmem [thread:$0]  %s2361_s7, 16, %s90_s23, [#allocation11]  }
  0x26   :  { %s2151_s30 = smov [#allocation13]  }
  0x27   :  { %s110_s15 = sshll.u32 %s2151_s30, 4  ;;  %s111_s15 = int_to_ptr.vmem [resolvable:$true] %s110_s15 }
  0x28   :  { %s2002_s18 = scalar_lea.vmem %s111_s15, 2048  ;;  %p2007_p2 = scmp.lt.s32.totalorder %s111_s15, %s111_s15 }
  0x29   :  { %p2003_p1 = scmp.ne.s32.totalorder %s111_s15, %s2002_s18  ;;  %p2008_p3 = scmp.lt.s32.totalorder %s2002_s18, %s2002_s18 }
  0x2b   :  { %p2009_p4 = por %p2008_p3, %p2007_p2 }
  0x2d   :  { %p2010_p5 = pnand %p2009_p4, %p2003_p1 }
  0x2f   :  { %2013 = shalt.err (!%p2010_p5)
}
  0x30   :  { %s2152_s5 = smov 64   ;;  %s2153_s16 = smov 4  }
  0x31   :  { %116 = dma.hbm_to_vmem [thread:$0]  %s2364_s10, 2048, %s111_s15, [#allocation14], %s2152_s5, %s2152_s5, %s2153_s16  }
  0x32   :  { %s2154_s20 = smov [#allocation2]   ;;  %s2155_s22 = smov [#allocation6]  }
  0x33   :  { %s33_s21 = sshll.u32 %s2154_s20, 4  ;;  %s55_s7 = sshll.u32 %s2155_s22, 4  ;;  %s34_s21 = int_to_ptr.vmem [resolvable:$true] %s33_s21  ;;  %s56_s7 = int_to_ptr.vmem [resolvable:$true] %s55_s7 }
  0x34   :  { %s2022_s23 = scalar_lea.vmem %s34_s21, 256  ;;  %p2027_p7 = scmp.lt.s32.totalorder %s34_s21, %s34_s21 }
  0x35   :  { %p2023_p6 = scmp.ne.s32.totalorder %s34_s21, %s2022_s23  ;;  %p2028_p8 = scmp.lt.s32.totalorder %s2022_s23, %s2022_s23 }
  0x37   :  { %p2029_p9 = por %p2028_p8, %p2027_p7 }
  0x39   :  { %p2030_p10 = pnand %p2029_p9, %p2023_p6 }
  0x3b   :  { %2033 = shalt.err (!%p2030_p10)
}
  0x3c   :  { %36 = dma.hbm_to_vmem [thread:$0]  %s2355_s1, 256, %s34_s21, [#allocation3]  }
  0x3d   :  { %s2042_s26 = scalar_lea.vmem %s56_s7, 48  ;;  %s2046_s10 = scalar_lea.vmem %s56_s7, 64 }
  0x3e   :  { %p2043_p11 = scmp.ne.s32.totalorder %s56_s7, %s2042_s26  ;;  %p2047_p12 = scmp.lt.s32.totalorder %s56_s7, %s56_s7 }
  0x3f   :  { %p2048_p13 = scmp.lt.s32.totalorder %s2046_s10, %s2042_s26 }
  0x41   :  { %p2049_p0 = por %p2048_p13, %p2047_p12 }
  0x43   :  { %p2050_p1 = pnand %p2049_p0, %p2043_p11 }
  0x45   :  { %2053 = shalt.err (!%p2050_p1)
}
  0x46   :  { %58 = dma.hbm_to_vmem [thread:$0]  %s2357_s3, 48, %s56_s7, [#allocation5]  }
  0x47   :  { %s2156_s28 = smov [#allocation9]   ;;  %s2157_s30 = smov [#allocation12]  }
  0x48   :  { %s79_s29 = sshll.u32 %s2156_s28, 4  ;;  %s101_s15 = sshll.u32 %s2157_s30, 4  ;;  %s80_s29 = int_to_ptr.vmem [resolvable:$true] %s79_s29  ;;  %s102_s15 = int_to_ptr.vmem [resolvable:$true] %s101_s15 }
  0x49   :  { %s2062_s18 = scalar_lea.vmem %s80_s29, 48  ;;  %s2066_s1 = scalar_lea.vmem %s80_s29, 64 }
  0x4a   :  { %p2063_p2 = scmp.ne.s32.totalorder %s80_s29, %s2062_s18  ;;  %p2067_p3 = scmp.lt.s32.totalorder %s80_s29, %s80_s29 }
  0x4b   :  { %p2068_p4 = scmp.lt.s32.totalorder %s2066_s1, %s2062_s18 }
  0x4d   :  { %p2069_p5 = por %p2068_p4, %p2067_p3 }
  0x4f   :  { %p2070_p6 = pnand %p2069_p5, %p2063_p2 }
  0x51   :  { %2073 = shalt.err (!%p2070_p6)
}
  0x52   :  { %82 = dma.hbm_to_vmem [thread:$0]  %s2360_s6, 48, %s80_s29, [#allocation8]  }
  0x53   :  { %s2082_s17 = scalar_lea.vmem %s102_s15, 16  ;;  %s2086_s3 = scalar_lea.vmem %s102_s15, 32 }
  0x54   :  { %p2083_p7 = scmp.ne.s32.totalorder %s102_s15, %s2082_s17  ;;  %p2087_p8 = scmp.lt.s32.totalorder %s102_s15, %s102_s15 }
  0x55   :  { %p2088_p9 = scmp.lt.s32.totalorder %s2086_s3, %s2082_s17 }
  0x57   :  { %p2089_p10 = por %p2088_p9, %p2087_p8 }
  0x59   :  { %p2090_p11 = pnand %p2089_p10, %p2083_p7 }
  0x5b   :  { %2093 = shalt.err (!%p2090_p11)
}
  0x5c   :  { %104 = dma.hbm_to_vmem [thread:$0]  %s2363_s9, 16, %s102_s15, [#allocation11]  }
  0x5d   :  { %s2158_s21 = smov [#allocation15]   ;;  %s2159_s7 = smov [#allocation16]  }
  0x5e   :  { %s123_s22 = sshll.u32 %s2158_s21, 4  ;;  %s135_s23 = sshll.u32 %s2159_s7, 4  ;;  %s124_s22 = int_to_ptr.vmem [resolvable:$true] %s123_s22  ;;  %s136_s23 = int_to_ptr.vmem [resolvable:$true] %s135_s23 }
  0x5f   :  { %s2102_s24 = scalar_lea.vmem %s124_s22, 16  ;;  %s2106_s6 = scalar_lea.vmem %s124_s22, 32 }
  0x60   :  { %p2103_p12 = scmp.ne.s32.totalorder %s124_s22, %s2102_s24  ;;  %p2107_p13 = scmp.lt.s32.totalorder %s124_s22, %s124_s22 }
  0x61   :  { %p2108_p0 = scmp.lt.s32.totalorder %s2106_s6, %s2102_s24 }
  0x63   :  { %p2109_p1 = por %p2108_p0, %p2107_p13 }
  0x65   :  { %p2110_p2 = pnand %p2109_p1, %p2103_p12 }
  0x67   :  { %2113 = shalt.err (!%p2110_p2)
}
  0x68   :  { %126 = dma.hbm_to_vmem [thread:$0]  %s2365_s11, 16, %s124_s22, [#allocation14]  }
  0x69   :  { %s2122_s10 = scalar_lea.vmem %s136_s23, 16  ;;  %s2126_s9 = scalar_lea.vmem %s136_s23, 32 }
  0x6a   :  { %p2123_p3 = scmp.ne.s32.totalorder %s136_s23, %s2122_s10  ;;  %p2127_p4 = scmp.lt.s32.totalorder %s136_s23, %s136_s23 }
  0x6b   :  { %p2128_p5 = scmp.lt.s32.totalorder %s2126_s9, %s2122_s10 }
  0x6d   :  { %p2129_p6 = por %p2128_p5, %p2127_p4 }
  0x6f   :  { %p2130_p7 = pnand %p2129_p6, %p2123_p3 }
  0x71   :  { %2133 = shalt.err (!%p2130_p7)
}
  0x72   :  { %138 = dma.hbm_to_vmem [thread:$0]  %s2367_s13, 16, %s136_s23, [#allocation17]  }
  0x73   :  { %2134 = dma.done.wait [#allocation3], 256  }
  0x74   :  { %2135 = vsyncadd [#allocation3], 4294967040 }
  0x75   :  { %2136 = dma.done.wait [#allocation5], 6192  }
  0x76   :  { %2137 = vsyncadd [#allocation5], 4294961104 }
  0x77   :  { %2138 = dma.done.wait [#allocation8], 6192  }
  0x78   :  { %2139 = vsyncadd [#allocation8], 4294961104 }
  0x79   :  { %2140 = dma.done.wait [#allocation11], 32  }
  0x7a   :  { %2141 = vsyncadd [#allocation11], 4294967264 }
  0x7b   :  { %2142 = dma.done.wait [#allocation14], 2064  }
  0x7c   :  { %2143 = vsyncadd [#allocation14], 4294965232 }
  0x7d   :  { %2144 = dma.done.wait [#allocation17], 16  }
  0x7e   :  { %2145 = vsyncadd [#allocation17], 4294967280  ;;  %v1754_v0 = vld [vmem:[#allocation4 + $0xac] ss:$12 sps:$4 sm:$0xff]   ;;  %v1756_v1 = vld [vmem:[#allocation4 + $0x170] ss:$12 sps:$4 sm:$0xff]  }
  0x7f   :  { %511 = vmatprep.subr.bf16.mxu0 %v1754_v0  ;;  %v1757_v2 = vld [vmem:[#allocation4 + $0xa8] ss:$12 sps:$4 sm:$0xff]   ;;  %1614 = vmatprep.subr.bf16.mxu1 %v1756_v1  ;;  %v1758_v3 = vld [vmem:[#allocation4 + $0xb0] ss:$12 sps:$4 sm:$0xff]   ;;  %v1761_v5 = vld [vmem:[#allocation4 + $0x158] ss:$12 sps:$4 sm:$0xff]  }
  0x80   :  { %512 = vmatpush1.bf16.msra.mxu0 %v1757_v2  ;;  %v1759_v4 = vld [vmem:[#allocation4 + $0x94] ss:$12 sps:$4 sm:$0xff]   ;;  %1615 = vmatpush3.bf16.msra.mxu1 %v1758_v3  ;;  %v1762_v6 = vld [vmem:[#allocation4 + $0x90] ss:$12 sps:$4 sm:$0xff]   ;;  %v1763_v7 = vld [vmem:[#allocation4 + $0x98] ss:$12 sps:$4 sm:$0xff]  }
  0x81   :  { %513 = vmatprep.subr.bf16.mxu0 %v1759_v4  ;;  %1616 = vmatprep.subr.bf16.mxu1 %v1761_v5  ;;  %v1764_v8 = vld [vmem:[#allocation4 + $0x7c] ss:$12 sps:$4 sm:$0xff]   ;;  %v1766_v9 = vld [vmem:[#allocation4 + $0x140] ss:$12 sps:$4 sm:$0xff]   ;;  %v1767_v10 = vld [vmem:[#allocation4 + $0x78] ss:$12 sps:$4 sm:$0xff]  }
  0x82   :  { %v1768_v11 = vld [vmem:[#allocation4 + $0x80] ss:$12 sps:$4 sm:$0xff]   ;;  %v1769_v12 = vld [vmem:[#allocation4 + $0x64] ss:$12 sps:$4 sm:$0xff]   ;;  %v1771_v13 = vld [vmem:[#allocation4 + $0x128] ss:$12 sps:$4 sm:$0xff]  }
  0x83   :  { %v1772_v14 = vld [vmem:[#allocation4 + $0x60] ss:$12 sps:$4 sm:$0xff]   ;;  %v1773_v15 = vld [vmem:[#allocation4 + $0x68] ss:$12 sps:$4 sm:$0xff]   ;;  %v1776_v17 = vld [vmem:[#allocation4 + $0x110] ss:$12 sps:$4 sm:$0xff]  }
  0x84   :  { %514 = vmatpush1.bf16.msra.mxu0 %v1762_v6  ;;  %1617 = vmatpush3.bf16.msra.mxu1 %v1763_v7  ;;  %v1774_v16 = vld [vmem:[#allocation4 + $0x4c] ss:$12 sps:$4 sm:$0xff]   ;;  %v1777_v18 = vld [vmem:[#allocation4 + $0x48] ss:$12 sps:$4 sm:$0xff]   ;;  %v1778_v19 = vld [vmem:[#allocation4 + $0x50] ss:$12 sps:$4 sm:$0xff]  }
  0x85   :  { %515 = vmatprep.subr.bf16.mxu0 %v1764_v8  ;;  %1618 = vmatprep.subr.bf16.mxu1 %v1766_v9  ;;  %v1779_v20 = vld [vmem:[#allocation4 + $0x34] ss:$12 sps:$4 sm:$0xff]   ;;  %v1781_v21 = vld [vmem:[#allocation4 + $0xf8] ss:$12 sps:$4 sm:$0xff]   ;;  %v1782_v22 = vld [vmem:[#allocation4 + $0x30] ss:$12 sps:$4 sm:$0xff]  }
  0x86   :  { %v1783_v23 = vld [vmem:[#allocation4 + $0x38] ss:$12 sps:$4 sm:$0xff]   ;;  %v1784_v24 = vld [vmem:[#allocation4 + $0x1c] ss:$12 sps:$4 sm:$0xff]   ;;  %v1786_v25 = vld [vmem:[#allocation4 + $0xe0] ss:$12 sps:$4 sm:$0xff]  }
  0x87   :  { %v1787_v26 = vld [vmem:[#allocation4 + $0x18] ss:$12 sps:$4 sm:$0xff]   ;;  %v1788_v27 = vld [vmem:[#allocation4 + $0x20] ss:$12 sps:$4 sm:$0xff]   ;;  %v1791_v29 = vld [vmem:[#allocation4 + $0xc8] ss:$12 sps:$4 sm:$0xff]  }
  0x88   :  { %516 = vmatpush1.bf16.msra.mxu0 %v1767_v10  ;;  %1619 = vmatpush3.bf16.msra.mxu1 %v1768_v11  ;;  %v1789_v28 = vld [vmem:[#allocation4 + $0x4] ss:$12 sps:$4 sm:$0xff]   ;;  %v171_v30 = vld [vmem:[%s2354_s0 + $0x8] sm:$0xff]  ;;  %v1792_v32 = vld [vmem:[#allocation4] ss:$12 sps:$4 sm:$0xff]   ;;  %vm2161_vm0 = vmmov 0  }
  0x89   :  { %517 = vmatprep.subr.bf16.mxu0 %v1769_v12  ;;  %1620 = vmatprep.subr.bf16.mxu1 %v1771_v13  ;;  %v173_v31 = vpack.c.bf16 %v171_v30, %v171_v30  ;;  %v1793_v33 = vld [vmem:[#allocation4 + $0x8] ss:$12 sps:$4 sm:$0xff]   ;;  %v1794_v34 = vld [vmem:[#allocation4 + $0x16c] ss:$12 sps:$4 sm:$0xff]   ;;  %v1798_v36 = vld [vmem:[#allocation7 + $0xac] ss:$12 sps:$4 sm:$0xff]  }
  0x8a   :  { %v170_v35 = vld [vmem:[%s2354_s0] sm:$0xff]  ;;  %v1796_v38 = vld [vmem:[#allocation7 + $0xa8] ss:$12 sps:$4 sm:$0xff]   ;;  %v1806_v44 = vld [vmem:[#allocation4 + $0x13c] ss:$12 sps:$4 sm:$0xff]   ;;  %vm1465_vm1 = vcmask 15360  }
  0x8b   :  { %584 = vmatprep.mubr.bf16.mxu1 %v173_v31  ;;  %543 = vmatprep.mubr.bf16.mxu0 %v173_v31  ;;  %v2273_v37 = vpack.c.bf16 %v170_v35, %v170_v35  ;;  %v1799_v39 = vld [vmem:[#allocation4 + $0x168] ss:$12 sps:$4 sm:$0xff]   ;;  %v1804_v41 = vld [vmem:[#allocation7 + $0x94] ss:$12 sps:$4 sm:$0xff]   ;;  %v1805_v42 = vld [vmem:[#allocation4 + $0x150] ss:$12 sps:$4 sm:$0xff]  }
  0x8c   :  { %518 = vmatpush1.bf16.msra.mxu0 %v1772_v14  ;;  %1621 = vmatpush3.bf16.msra.mxu1 %v1773_v15  ;;  %v1800_v40 = vld [vmem:[#allocation4 + $0x154] ss:$12 sps:$4 sm:$0xff]   ;;  %v1808_v46 = vld [vmem:[#allocation7 + $0x78] ss:$12 sps:$4 sm:$0xff]   ;;  %v1811_v47 = vld [vmem:[#allocation4 + $0x138] ss:$12 sps:$4 sm:$0xff]  }
  0x8d   :  { %519 = vmatprep.subr.bf16.mxu0 %v1774_v16  ;;  %1622 = vmatprep.subr.bf16.mxu1 %v1776_v17  ;;  %v1802_v43 = vld [vmem:[#allocation7 + $0x90] ss:$12 sps:$4 sm:$0xff]   ;;  %v1812_v48 = vld [vmem:[#allocation4 + $0x124] ss:$12 sps:$4 sm:$0xff]   ;;  %v1818_v52 = vld [vmem:[#allocation4 + $0x10c] ss:$12 sps:$4 sm:$0xff]  }
  0x8e   :  { %v1810_v45 = vld [vmem:[#allocation7 + $0x7c] ss:$12 sps:$4 sm:$0xff]   ;;  %v1816_v49 = vld [vmem:[#allocation7 + $0x64] ss:$12 sps:$4 sm:$0xff]   ;;  %v1814_v51 = vld [vmem:[#allocation7 + $0x60] ss:$12 sps:$4 sm:$0xff]  }
  0x8f   :  { %v1817_v50 = vld [vmem:[#allocation4 + $0x120] ss:$12 sps:$4 sm:$0xff]   ;;  %v1822_v53 = vld [vmem:[#allocation7 + $0x4c] ss:$12 sps:$4 sm:$0xff]   ;;  %v1823_v54 = vld [vmem:[#allocation4 + $0x108] ss:$12 sps:$4 sm:$0xff]  }
  0x90   :  { %520 = vmatpush1.bf16.msra.mxu0 %v1777_v18  ;;  %1623 = vmatpush3.bf16.msra.mxu1 %v1778_v19  ;;  %v1820_v55 = vld [vmem:[#allocation7 + $0x48] ss:$12 sps:$4 sm:$0xff]   ;;  %v1824_v56 = vld [vmem:[#allocation4 + $0xf4] ss:$12 sps:$4 sm:$0xff]   ;;  %v1829_v58 = vld [vmem:[#allocation4 + $0xf0] ss:$12 sps:$4 sm:$0xff]  }
  0x91   :  { %521 = vmatprep.subr.bf16.mxu0 %v1779_v20  ;;  %1624 = vmatprep.subr.bf16.mxu1 %v1781_v21  ;;  %v1828_v57 = vld [vmem:[#allocation7 + $0x34] ss:$12 sps:$4 sm:$0xff]   ;;  %v1826_v59 = vld [vmem:[#allocation7 + $0x30] ss:$12 sps:$4 sm:$0xff]   ;;  %v1830_v60 = vld [vmem:[#allocation4 + $0xdc] ss:$12 sps:$4 sm:$0xff]  }
  0x92   :  { %v1834_v61 = vld [vmem:[#allocation7 + $0x1c] ss:$12 sps:$4 sm:$0xff]   ;;  %v1835_v62 = vld [vmem:[#allocation4 + $0xd8] ss:$12 sps:$4 sm:$0xff]   ;;  %v1832_v63 = vld [vmem:[#allocation7 + $0x18] ss:$12 sps:$4 sm:$0xff]  }
  0x93   :  { %v1836_v0 = vld [vmem:[#allocation4 + $0xc4] ss:$12 sps:$4 sm:$0xff]   ;;  %v1840_v1 = vld [vmem:[#allocation7 + $0x4] ss:$12 sps:$4 sm:$0xff]   ;;  %v1841_v3 = vld [vmem:[#allocation4 + $0xc0] ss:$12 sps:$4 sm:$0xff]  }
  0x94   :  { %522 = vmatpush1.bf16.msra.mxu0 %v1782_v22  ;;  %1625 = vmatpush3.bf16.msra.mxu1 %v1783_v23  ;;  %v1838_v2 = vld [vmem:[#allocation7] ss:$12 sps:$4 sm:$0xff]   ;;  %v1863_v4 = vld [vmem:[#allocation7 + $0x170] ss:$12 sps:$4 sm:$0xff]   ;;  %v1842_v6 = vld [vmem:[#allocation7 + $0x168] ss:$12 sps:$4 sm:$0xff]  }
  0x95   :  { %523 = vmatprep.subr.bf16.mxu0 %v1784_v24  ;;  %1626 = vmatprep.subr.bf16.mxu1 %v1786_v25  ;;  %v1844_v5 = vld [vmem:[#allocation7 + $0x16c] ss:$12 sps:$4 sm:$0xff]   ;;  %v1864_v8 = vld [vmem:[#allocation7 + $0xb0] ss:$12 sps:$4 sm:$0xff]   ;;  %v1847_v11 = vld [vmem:[#allocation7 + $0x154] ss:$12 sps:$4 sm:$0xff]  }
  0x96   :  { %v617_v7 = vld [vmem:[#allocation2 + $0x8] sm:$0xff]  ;;  %v1845_v12 = vld [vmem:[#allocation7 + $0x150] ss:$12 sps:$4 sm:$0xff]   ;;  %v1870_v14 = vld [vmem:[#allocation7 + $0x140] ss:$12 sps:$4 sm:$0xff]  }
  0x97   :  { %v619_v9 = vpack.c.bf16 %v617_v7, %v617_v7  ;;  %v1868_v10 = vld [vmem:[#allocation7 + $0x158] ss:$12 sps:$4 sm:$0xff]   ;;  %v1850_v15 = vld [vmem:[#allocation7 + $0x13c] ss:$12 sps:$4 sm:$0xff]   ;;  %v1871_v18 = vld [vmem:[#allocation7 + $0x80] ss:$12 sps:$4 sm:$0xff]  }
  0x98   :  { %524 = vmatpush1.bf16.msra.mxu0 %v1787_v26  ;;  %1627 = vmatpush3.bf16.msra.mxu1 %v1788_v27  ;;  %v1869_v13 = vld [vmem:[#allocation7 + $0x98] ss:$12 sps:$4 sm:$0xff]   ;;  %v1872_v19 = vld [vmem:[#allocation7 + $0x128] ss:$12 sps:$4 sm:$0xff]   ;;  %v1851_v21 = vld [vmem:[#allocation7 + $0x120] ss:$12 sps:$4 sm:$0xff]  }
  0x99   :  { %525 = vmatprep.subr.bf16.mxu0 %v1789_v28  ;;  %1628 = vmatprep.subr.bf16.mxu1 %v1791_v29  ;;  %v1848_v16 = vld [vmem:[#allocation7 + $0x138] ss:$12 sps:$4 sm:$0xff]   ;;  %v1873_v20 = vld [vmem:[#allocation7 + $0x68] ss:$12 sps:$4 sm:$0xff]   ;;  %v1874_v22 = vld [vmem:[#allocation7 + $0x110] ss:$12 sps:$4 sm:$0xff]  }
  0x9a   :  { %v1853_v17 = vld [vmem:[#allocation7 + $0x124] ss:$12 sps:$4 sm:$0xff]   ;;  %v1856_v23 = vld [vmem:[#allocation7 + $0x10c] ss:$12 sps:$4 sm:$0xff]   ;;  %v1854_v25 = vld [vmem:[#allocation7 + $0x108] ss:$12 sps:$4 sm:$0xff]  }
  0x9b   :  { %v1875_v24 = vld [vmem:[#allocation7 + $0x50] ss:$12 sps:$4 sm:$0xff]   ;;  %v1876_v26 = vld [vmem:[#allocation7 + $0xf8] ss:$12 sps:$4 sm:$0xff]   ;;  %v1859_v27 = vld [vmem:[#allocation7 + $0xf4] ss:$12 sps:$4 sm:$0xff]  }
  0x9c   :  { %526 = vmatpush1.bf16.msra.mxu0 %v1792_v32  ;;  %1629 = vmatpush3.bf16.msra.mxu1 %v1793_v33  ;;  %v1877_v28 = vld [vmem:[#allocation7 + $0x38] ss:$12 sps:$4 sm:$0xff]   ;;  %v1857_v29 = vld [vmem:[#allocation7 + $0xf0] ss:$12 sps:$4 sm:$0xff]   ;;  %v1878_v30 = vld [vmem:[#allocation7 + $0xe0] ss:$12 sps:$4 sm:$0xff]  }
  0x9d   :  { %527 = vmatprep.subr.bf16.mxu0 %v1794_v34  ;;  %957 = vmatprep.subr.bf16.mxu1 %v1798_v36  ;;  %v1862_v31 = vld [vmem:[#allocation7 + $0xdc] ss:$12 sps:$4 sm:$0xff]   ;;  %v1879_v32 = vld [vmem:[#allocation7 + $0x20] ss:$12 sps:$4 sm:$0xff]   ;;  %v1860_v33 = vld [vmem:[#allocation7 + $0xd8] ss:$12 sps:$4 sm:$0xff]  }
  0x9e   :  { %v1880_v34 = vld [vmem:[#allocation7 + $0xc8] ss:$12 sps:$4 sm:$0xff]   ;;  %v1867_v35 = vld [vmem:[#allocation7 + $0xc4] ss:$12 sps:$4 sm:$0xff]  }
  0x9f   :  { %585 = vmatmul.mubr.bf16.vlgmr.msra.gmra.mxu1 %v2273_v37  ;;  %v1881_v36 = vld [vmem:[#allocation7 + $0x8] ss:$12 sps:$4 sm:$0xff]  }
  0xa0   :  { %528 = vmatpush2.bf16.msra.mxu0 %v1799_v39  ;;  %958 = vmatpush1.bf16.msra.mxu1 %v1796_v38  ;;  %v616_v38 = vld [vmem:[#allocation2] sm:$0xff] }
  0xa1   :  { %529 = vmatprep.subr.bf16.mxu0 %v1800_v40  ;;  %959 = vmatprep.subr.bf16.mxu1 %v1804_v41  ;;  %v618_v39 = vpack.c.bf16 %v616_v38, %v616_v38  ;;  %v1882_v40 = vld [vmem:[%s2362_s8 + $0x38] sm:$0xff]   ;;  %v2160_v41 = vmov 0.0  }
  0xa2   :  { %989 = vmatprep.mubr.bf16.mxu1 %v619_v9 }
  0xa4   :  { %530 = vmatpush2.bf16.msra.mxu0 %v1805_v42  ;;  %960 = vmatpush1.bf16.msra.mxu1 %v1802_v43  ;;  %v1883_v42 = vld [vmem:[%s2362_s8 + $0x30] sm:$0xff]   ;;  %v1884_v43 = vld [vmem:[%s2362_s8 + $0x28] sm:$0xff]  }
  0xa5   :  { %531 = vmatprep.subr.bf16.mxu0 %v1806_v44  ;;  %961 = vmatprep.subr.bf16.mxu1 %v1810_v45  ;;  %v1885_v44 = vld [vmem:[%s2362_s8 + $0x20] sm:$0xff]   ;;  %v1886_v45 = vld [vmem:[%s2362_s8 + $0x18] sm:$0xff]  }
  0xa8   :  { %532 = vmatpush2.bf16.msra.mxu0 %v1811_v47  ;;  %962 = vmatpush1.bf16.msra.mxu1 %v1808_v46  ;;  %v1887_v46 = vld [vmem:[%s2362_s8 + $0x10] sm:$0xff]   ;;  %v1888_v47 = vld [vmem:[%s2362_s8 + $0x8] sm:$0xff]  }
  0xa9   :  { %533 = vmatprep.subr.bf16.mxu0 %v1812_v48  ;;  %963 = vmatprep.subr.bf16.mxu1 %v1816_v49  ;;  %v1889_v48 = vld [vmem:[%s2362_s8] sm:$0xff]   ;;  %v1890_v49 = vld [vmem:[#allocation13 + $0x78] sm:$0xff]  }
  0xac   :  { %534 = vmatpush2.bf16.msra.mxu0 %v1817_v50  ;;  %964 = vmatpush1.bf16.msra.mxu1 %v1814_v51  ;;  %v1891_v50 = vld [vmem:[#allocation13 + $0x38] sm:$0xff]   ;;  %v1892_v51 = vld [vmem:[#allocation13 + $0x70] sm:$0xff]  }
  0xad   :  { %535 = vmatprep.subr.bf16.mxu0 %v1818_v52  ;;  %965 = vmatprep.subr.bf16.mxu1 %v1822_v53  ;;  %v1893_v52 = vld [vmem:[#allocation13 + $0x30] sm:$0xff]   ;;  %v1894_v53 = vld [vmem:[#allocation13 + $0x68] sm:$0xff]  }
  0xb0   :  { %536 = vmatpush2.bf16.msra.mxu0 %v1823_v54  ;;  %966 = vmatpush1.bf16.msra.mxu1 %v1820_v55  ;;  %v1895_v55 = vld [vmem:[#allocation13 + $0x28] sm:$0xff]  }
  0xb1   :  { %537 = vmatprep.subr.bf16.mxu0 %v1824_v56  ;;  %967 = vmatprep.subr.bf16.mxu1 %v1828_v57  ;;  %v1896_v56 = vld [vmem:[#allocation13 + $0x60] sm:$0xff]  }
  0xb4   :  { %538 = vmatpush2.bf16.msra.mxu0 %v1829_v58  ;;  %968 = vmatpush1.bf16.msra.mxu1 %v1826_v59 }
  0xb5   :  { %539 = vmatprep.subr.bf16.mxu0 %v1830_v60  ;;  %969 = vmatprep.subr.bf16.mxu1 %v1834_v61  ;;  %v1897_v60 = vld [vmem:[#allocation13 + $0x20] sm:$0xff]   ;;  %v1898_v61 = vld [vmem:[#allocation13 + $0x58] sm:$0xff]  }
  0xb8   :  { %540 = vmatpush2.bf16.msra.mxu0 %v1835_v62  ;;  %970 = vmatpush1.bf16.msra.mxu1 %v1832_v63  ;;  %v1899_v63 = vld [vmem:[#allocation13 + $0x18] sm:$0xff]  }
  0xb9   :  { %541 = vmatprep.subr.bf16.mxu0 %v1836_v0  ;;  %971 = vmatprep.subr.bf16.mxu1 %v1840_v1  ;;  %v1900_v0 = vld [vmem:[#allocation13 + $0x50] sm:$0xff]  }
  0xba   :  { %v1901_v1 = vld [vmem:[#allocation13 + $0x10] sm:$0xff]  }
  0xbc   :  { %542 = vmatpush2.bf16.msra.mxu0 %v1841_v3  ;;  %972 = vmatpush1.bf16.msra.mxu1 %v1838_v2 }
  0xbd   :  { %1636 = vmatprep.subr.bf16.mxu0 %v1863_v4  ;;  %973 = vmatprep.subr.bf16.mxu1 %v1844_v5  ;;  %v240_v4 = vlaneseq }
  0xbf   :  { %544 = vmatmul.mubr.bf16.vlgmr.msra.gmra.mxu0 %v2273_v37  ;;  %v1865_v37 = vld [vmem:[#allocation7 + $0xc0] ss:$12 sps:$4 sm:$0xff]   ;;  %v241_v7 = vshrl.u32 %v240_v4, 7  ;;  %v1906_v4 = vld [vmem:[%s2366_s12 + $0x38] sm:$0xff]  }
  0xc0   :  { %1637 = vmatpush3.bf16.msra.mxu0 %v1864_v8  ;;  %1030 = vmatprep.mubr.bf16.mxu0 %v619_v9  ;;  %v238_v9 = vld [vmem:[#allocation6] sm:$0x7] }
  0xc1   :  { %974 = vmatpush2.bf16.msra.mxu1 %v1842_v6  ;;  %1638 = vmatprep.subr.bf16.mxu0 %v1868_v10  ;;  %v242_v8 = vsub.s32 0, %v241_v7 }
  0xc2   :  { %975 = vmatprep.subr.bf16.mxu1 %v1847_v11 }
  0xc3   :  { %v243_v10 = vrot.slane %v238_v9, %v242_v8 }
  0xc4   :  { %1639 = vmatpush3.bf16.msra.mxu0 %v1869_v13  ;;  %v684_v13 = vld [vmem:[#allocation9] sm:$0x7] }
  0xc5   :  { %976 = vmatpush2.bf16.msra.mxu1 %v1845_v12  ;;  %1640 = vmatprep.subr.bf16.mxu0 %v1870_v14  ;;  %v246_v14 = vsub.s32 1, %v241_v7 }
  0xc6   :  { %977 = vmatprep.subr.bf16.mxu1 %v1850_v15  ;;  %v689_v15 = vrot.slane %v684_v13, %v242_v8  ;;  %v1910_v8 = vld [vmem:[%s2366_s12 + $0x18] sm:$0xff]  }
  0xc8   :  { %1641 = vmatpush3.bf16.msra.mxu0 %v1871_v18 }
  0xc9   :  { %978 = vmatpush2.bf16.msra.mxu1 %v1848_v16  ;;  %1642 = vmatprep.subr.bf16.mxu0 %v1872_v19 }
  0xca   :  { %979 = vmatprep.subr.bf16.mxu1 %v1853_v17  ;;  %v247_v17 = vrot.slane %v238_v9, %v246_v14 }
  0xcc   :  { %1643 = vmatpush3.bf16.msra.mxu0 %v1873_v20 }
  0xcd   :  { %980 = vmatpush2.bf16.msra.mxu1 %v1851_v21  ;;  %1644 = vmatprep.subr.bf16.mxu0 %v1874_v22 }
  0xce   :  { %981 = vmatprep.subr.bf16.mxu1 %v1856_v23  ;;  %v693_v23 = vrot.slane %v684_v13, %v246_v14 }
  0xd0   :  { %1645 = vmatpush3.bf16.msra.mxu0 %v1875_v24 }
  0xd1   :  { %982 = vmatpush2.bf16.msra.mxu1 %v1854_v25  ;;  %1646 = vmatprep.subr.bf16.mxu0 %v1876_v26 }
  0xd2   :  { %983 = vmatprep.subr.bf16.mxu1 %v1859_v27 }
  0xd4   :  { %1647 = vmatpush3.bf16.msra.mxu0 %v1877_v28 }
  0xd5   :  { %984 = vmatpush2.bf16.msra.mxu1 %v1857_v29  ;;  %1648 = vmatprep.subr.bf16.mxu0 %v1878_v30 }
  0xd6   :  { %985 = vmatprep.subr.bf16.mxu1 %v1862_v31 }
  0xd8   :  { %1649 = vmatpush3.bf16.msra.mxu0 %v1879_v32 }
  0xd9   :  { %986 = vmatpush2.bf16.msra.mxu1 %v1860_v33  ;;  %1650 = vmatprep.subr.bf16.mxu0 %v1880_v34 }
  0xda   :  { %987 = vmatprep.subr.bf16.mxu1 %v1867_v35 }
  0xdc   :  { %1651 = vmatpush3.bf16.msra.mxu0 %v1881_v36  ;;  %v250_v36 = vsub.s32 2, %v241_v7  ;;  %v1909_v7 = vld [vmem:[%s2366_s12 + $0x20] sm:$0xff]  }
  0xdd   :  { %988 = vmatpush2.bf16.msra.mxu1 %v1865_v37  ;;  %1698 = vmatprep.subr.bf16.mxu0 %v2160_v41 }
  0xde   :  { %1667 = vmatprep.subr.bf16.mxu1 %v1890_v49  ;;  %v1578_v49 = vld [vmem:[#allocation10] ss:$0 sm:$0xff] }
  0xdf   :  { %1031 = vmatmul.mubr.bf16.vlgmr.msra.gmra.mxu0 %v618_v39 }
  0xe0   :  { %990 = vmatmul.mubr.bf16.vlgmr.msra.gmra.mxu1 %v618_v39  ;;  %1699 = vmatpush3.bf16.msra.mxu0 %v1882_v40  ;;  %v1527_v39 = vld [vmem:[%s2358_s4] ss:$0 sm:$0xff]  ;;  %v251_v40 = vrot.slane %v238_v9, %v250_v36 }
  0xe1   :  { %1700 = vmatprep.subr.bf16.mxu0 %v2160_v41  ;;  %1714 = vmatprep.mubr.msk.bf16.mxu0 %vm2161_vm0, %v2160_v41 }
  0xe2   :  { %1668 = vmatpush3.bf16.msra.mxu1 %v1891_v50 }
  0xe3   :  { %1669 = vmatprep.subr.bf16.mxu1 %v1892_v51 }
  0xe4   :  { %1701 = vmatpush3.bf16.msra.mxu0 %v1883_v42 }
  0xe5   :  { %1702 = vmatprep.subr.bf16.mxu0 %v2160_v41 }
  0xe6   :  { %1670 = vmatpush3.bf16.msra.mxu1 %v1893_v52 }
  0xe7   :  { %1671 = vmatprep.subr.bf16.mxu1 %v1894_v53 }
  0xe8   :  { %1703 = vmatpush3.bf16.msra.mxu0 %v1884_v43 }
  0xe9   :  { %1704 = vmatprep.subr.bf16.mxu0 %v2160_v41 }
  0xea   :  { %1672 = vmatpush3.bf16.msra.mxu1 %v1895_v55 }
  0xeb   :  { %1673 = vmatprep.subr.bf16.mxu1 %v1896_v56 }
  0xec   :  { %1705 = vmatpush3.bf16.msra.mxu0 %v1885_v44 }
  0xed   :  { %1706 = vmatprep.subr.bf16.mxu0 %v2160_v41 }
  0xee   :  { %1674 = vmatpush3.bf16.msra.mxu1 %v1897_v60 }
  0xef   :  { %1675 = vmatprep.subr.bf16.mxu1 %v1898_v61 }
  0xf0   :  { %1707 = vmatpush3.bf16.msra.mxu0 %v1886_v45 }
  0xf1   :  { %1708 = vmatprep.subr.bf16.mxu0 %v2160_v41 }
  0xf2   :  { %1676 = vmatpush3.bf16.msra.mxu1 %v1899_v63 }
  0xf3   :  { %1677 = vmatprep.subr.bf16.mxu1 %v1900_v0  ;;  %v1902_v0 = vld [vmem:[#allocation13 + $0x48] sm:$0xff]  }
  0xf4   :  { %1709 = vmatpush3.bf16.msra.mxu0 %v1887_v46 }
  0xf5   :  { %1710 = vmatprep.subr.bf16.mxu0 %v2160_v41 }
  0xf6   :  { %1678 = vmatpush3.bf16.msra.mxu1 %v1901_v1  ;;  %v1903_v1 = vld [vmem:[#allocation13 + $0x8] sm:$0xff]  }
  0xf7   :  { %1679 = vmatprep.subr.bf16.mxu1 %v1902_v0 }
  0xf8   :  { %1711 = vmatpush3.bf16.msra.mxu0 %v1888_v47  ;;  %v697_v47 = vrot.slane %v684_v13, %v250_v36 }
  0xf9   :  { %1712 = vmatprep.subr.bf16.mxu0 %v2160_v41 }
  0xfa   :  { %1680 = vmatpush3.bf16.msra.mxu1 %v1903_v1 }
  0xfc   :  { %1713 = vmatpush3.bf16.msra.mxu0 %v1889_v48 }
  0xfd   :  { %1718 = vmatprep.subr.bf16.mxu0 %v2160_v41 }
 0x15f   :  { %v1630_v54 = vpop.f32.mrf.mxu1 }
 0x161   :  { %v1631_v57 = vpop.f32.mrf.mxu1 }
 0x162   :  { %v2312_v58 = vadd.f32 %v1631_v57, %v1630_v54 }
 0x163   :  { %v1633_v59 = vpop.f32.mrf.mxu1 }
 0x164   :  { %v587_v45 = vadd.f32 %v2312_v58, %v251_v40 }
 0x165   :  { %v1634_v62 = vpop.f32.mrf.mxu1 }
 0x17f   :  { %v545_v2 = vpop.f32.mrf.mxu0 }
 0x180   :  { %v546_v11 = vadd.f32 %v545_v2, %v243_v10  ;;  %v1904_v2 = vld [vmem:[#allocation13 + $0x40] sm:$0xff]   ;;  %v1579_v10 = vld [vmem:[#allocation12] ss:$0 sm:$0xff] }
 0x181   :  { %v547_v3 = vpop.f32.mrf.mxu0  ;;  %1681 = vmatprep.subr.bf16.mxu1 %v1904_v2 }
 0x182   :  { %v1525_v12 = vmul.f32 -1.442695, %v546_v11  ;;  %v548_v25 = vadd.f32 %v547_v3, %v247_v17  ;;  %v1905_v3 = vld [vmem:[#allocation13] sm:$0xff]  }
 0x183   :  { %v549_v5 = vpop.f32.mrf.mxu0  ;;  %1682 = vmatpush3.bf16.msra.mxu1 %v1905_v3 }
 0x184   :  { %1914 = vpow2.f32 %v1525_v12  ;;  %v1526_v31 = vmul.f32 -1.442695, %v548_v25  ;;  %v1907_v5 = vld [vmem:[%s2366_s12 + $0x30] sm:$0xff]  }
 0x185   :  { %v550_v6 = vpop.f32.mrf.mxu0 }
 0x186   :  { %v1908_v6 = vld [vmem:[%s2366_s12 + $0x28] sm:$0xff]  }
 0x191   :  { %v1915_v28 = vpop.eup %1914 }
 0x192   :  { %v595_v32 = vadd.f32 1.0, %v1915_v28 }
 0x19f   :  { %v1652_v16 = vpop.f32.mrf.mxu0 }
 0x1a0   :  { %v991_v18 = vpop.f32.mrf.mxu1 }
 0x1a1   :  { %v992_v19 = vadd.f32 %v991_v18, %v689_v15  ;;  %v1653_v20 = vpop.f32.mrf.mxu0  ;;  %v1911_v18 = vld [vmem:[%s2366_s12 + $0x10] sm:$0xff]  }
 0x1a2   :  { %v993_v21 = vpop.f32.mrf.mxu1  ;;  %v1654_v48 = vadd.f32 %v1653_v20, %v1652_v16  ;;  %v1913_v20 = vld [vmem:[%s2366_s12] sm:$0xff]  }
 0x1a3   :  { %v1576_v22 = vmul.f32 -1.442695, %v992_v19  ;;  %v1655_v24 = vpop.f32.mrf.mxu0  ;;  %v994_v30 = vadd.f32 %v993_v21, %v693_v23  ;;  %v1912_v19 = vld [vmem:[%s2366_s12 + $0x8] sm:$0xff]  }
 0x1a4   :  { %v995_v26 = vpop.f32.mrf.mxu1  ;;  %v1033_v52 = vadd.f32 %v1654_v48, %v697_v47 }
 0x1a5   :  { %1916 = vpow2.f32 %v1576_v22  ;;  %v1656_v27 = vpop.f32.mrf.mxu0  ;;  %v1577_v33 = vmul.f32 -1.442695, %v994_v30  ;;  %v1588_v22 = vld [vmem:[#allocation15] ss:$0 sm:$0xff]  ;;  %v1605_v30 = vld [vmem:[#allocation16] ss:$0 sm:$0xff] }
 0x1a6   :  { %v996_v29 = vpop.f32.mrf.mxu1  ;;  %1918 = vpow2.f32 %v1526_v31 }
 0x1a7   :  { %1920 = vrcp.f32 %v595_v32 }
 0x1a8   :  { %1922 = vpow2.f32 %v1577_v33 }
 0x1b2   :  { %v1917_v34 = vpop.eup %1916 }
 0x1b3   :  { %v1041_v35 = vadd.f32 1.0, %v1917_v34  ;;  %v1919_v37 = vpop.eup %1918 }
 0x1b4   :  { %v1921_v38 = vpop.eup %1920  ;;  %v601_v44 = vadd.f32 1.0, %v1919_v37 }
 0x1b5   :  { %1924 = vrcp.f32 %v1041_v35  ;;  %v1923_v42 = vpop.eup %1922  ;;  %v611_v43 = vmul.f32 %v1921_v38, %v1527_v39 }
 0x1b6   :  { %v1047_v46 = vadd.f32 1.0, %v1923_v42  ;;  %1926 = vrcp.f32 %v601_v44 }
 0x1b7   :  { %v612_v50 = vadd.f32 %v611_v43, %v587_v45 }
 0x1b8   :  { %1928 = vrcp.f32 %v1047_v46 }
 0x1b9   :  { %1930 = vtanh.f32 %v612_v50 }
 0x1c2   :  { %v1925_v51 = vpop.eup %1924 }
 0x1c3   :  { %v1057_v53 = vmul.f32 %v1925_v51, %v1578_v49  ;;  %v1927_v55 = vpop.eup %1926 }
 0x1c4   :  { %v614_v57 = vsub.f32 1.0, %v1927_v55 }
 0x1c5   :  { %v1058_v54 = vadd.f32 %v1057_v53, %v1033_v52  ;;  %v1929_v56 = vpop.eup %1928 }
 0x1c6   :  { %v1931_v59 = vpop.eup %1930  ;;  %v1060_v60 = vsub.f32 1.0, %v1929_v56 }
 0x1c7   :  { %1932 = vtanh.f32 %v1058_v54  ;;  %v615_v58 = vmul.f32 %v1931_v59, %v614_v57 }
 0x1d4   :  { %v1933_v61 = vpop.eup %1932 }
 0x1d5   :  { %v1061_v62 = vmul.f32 %v1933_v61, %v1060_v60 }
 0x1d7   :  { %v1062_v63 = vpack.c.bf16 %v1061_v62, %v615_v58 }
 0x1d9   :  { %1715 = vmatmul.mubr.bf16.vlgmr.msra.gmra.mxu0 %v1062_v63 }
 0x1da   :  { %1734 = vmatprep.mubr.msk.bf16.mxu0 %vm2161_vm0, %v2160_v41  ;;  %1719 = vmatpush3.bf16.msra.mxu0 %v1906_v4 }
 0x1db   :  { %1720 = vmatprep.subr.bf16.mxu0 %v2160_v41 }
 0x1de   :  { %1721 = vmatpush3.bf16.msra.mxu0 %v1907_v5 }
 0x1df   :  { %1722 = vmatprep.subr.bf16.mxu0 %v2160_v41 }
 0x1e2   :  { %1723 = vmatpush3.bf16.msra.mxu0 %v1908_v6 }
 0x1e3   :  { %1724 = vmatprep.subr.bf16.mxu0 %v2160_v41 }
 0x1e6   :  { %1725 = vmatpush3.bf16.msra.mxu0 %v1909_v7 }
 0x1e7   :  { %1726 = vmatprep.subr.bf16.mxu0 %v2160_v41 }
 0x1ea   :  { %1727 = vmatpush3.bf16.msra.mxu0 %v1910_v8 }
 0x1eb   :  { %1728 = vmatprep.subr.bf16.mxu0 %v2160_v41 }
 0x1ee   :  { %1729 = vmatpush3.bf16.msra.mxu0 %v1911_v18 }
 0x1ef   :  { %1730 = vmatprep.subr.bf16.mxu0 %v2160_v41 }
 0x1f2   :  { %1731 = vmatpush3.bf16.msra.mxu0 %v1912_v19 }
 0x1f3   :  { %1732 = vmatprep.subr.bf16.mxu0 %v2160_v41 }
 0x1f6   :  { %1733 = vmatpush3.bf16.msra.mxu0 %v1913_v20 }
 0x299   :  { %v1168_v9 = vpop.f32.mrf.mxu0 }
 0x29a   :  { %v1169_v12 = vadd.f32 %v1579_v10, %v1168_v9 }
 0x29b   :  { %v1716_v11 = vpop.f32.mrf.mxu0 }
 0x29c   :  { %v1175_v17 = vpack.c.bf16 %v1169_v12, %v1169_v12 }
 0x29d   :  { %v1171_v13 = vpop.f32.mrf.mxu0 }
 0x29e   :  { %v1172_v14 = vadd.f32 %v1579_v10, %v1171_v13 }
 0x29f   :  { %v1717_v15 = vpop.f32.mrf.mxu0 }
 0x2a0   :  { %v1176_v16 = vpack.c.bf16 %v1172_v14, %v1172_v14 }
 0x2a2   :  { %1344 = vmatprep.mubr.bf16.mxu1 %v1176_v16 }
 0x2a3   :  { %1345 = vmatmul.mubr.bf16.vlgmr.msra.gmra.mxu1 %v1175_v17 }
 0x363   :  { %v1683_v21 = vpop.f32.mrf.mxu1 }
 0x365   :  { %v1684_v23 = vpop.f32.mrf.mxu1 }
 0x366   :  { %v1685_v24 = vadd.f32 %v1684_v23, %v1683_v21 }
 0x367   :  { %v1686_v25 = vpop.f32.mrf.mxu1 }
 0x368   :  { %v1347_v26 = vadd.f32 %v1685_v24, %v1588_v22 }
 0x369   :  { %v1687_v27 = vpop.f32.mrf.mxu1 }
 0x36a   :  { %v1352_v28 = vmax.f32 %v1347_v26, 0.0 }
 0x36c   :  { %v1353_v29 = vpack.c.bf16 %v1352_v28, %v1352_v28 }
 0x36e   :  { %1735 = vmatmul.mubr.bf16.vlgmr.msra.gmra.mxu0 %v1353_v29 }
 0x42e   :  { %v1459_v31 = vpop.f32.mrf.mxu0 }
 0x42f   :  { %v1460_v32 = vadd.f32 %v1605_v30, %v1459_v31 }
 0x430   :  { %v1736_v41 = vpop.f32.mrf.mxu0 }
 0x431   :  { %1466 = vst.msk [vmem:[%s2368_s14] sm:$0xff] %vm1465_vm1, %v1460_v32 }
 0x432   :  { %v1462_v33 = vpop.f32.mrf.mxu0 }
 0x434   :  { %v1737_v34 = vpop.f32.mrf.mxu0 }
 0x435   :  { %1471 = vsyncpa [#allocation3], 1 }
 0x436   :  { %1472 = vsyncpa [#allocation5], 1 }
 0x437   :  { %1473 = vsyncpa [#allocation8], 1 }
 0x438   :  { %1474 = vsyncpa [#allocation11], 1 }
 0x439   :  { %1475 = vsyncpa [#allocation14], 1 }
 0x43a   :  { %1476 = vsyncpa [#allocation17], 1 }

// kernel: forward.1
= control target key start
LH: loop header
LB: loop body
LE: loop exit
PB: predicated region body
PF: predicated region fallthrough
CT: control target
= control target key end

     0   :  { %19 = vsyncpa [#allocation3], 0  ;;  %s2354_s0 = inlined_call_operand.vmem [shape: f32[8,256], index: 0, kind: input, shape index: {}]   ;;  %s2355_s1 = inlined_call_operand.hbm [shape: f32[8,256], index: 1, kind: input, shape index: {}]   ;;  %s2356_s2 = inlined_call_operand.hbm [shape: bf16[256,384], index: 2, kind: input, shape index: {}]   ;;  %s2357_s3 = inlined_call_operand.hbm [shape: f32[1,384], index: 3, kind: input, shape index: {}]   ;;  %s2358_s4 = inlined_call_operand.vmem [shape: f32[1,128], index: 4, kind: input, shape index: {}]   ;;  %s2359_s5 = inlined_call_operand.hbm [shape: bf16[256,384], index: 5, kind: input, shape index: {}]   ;;  %s2360_s6 = inlined_call_operand.hbm [shape: f32[1,384], index: 6, kind: input, shape index: {}]   ;;  %s2361_s7 = inlined_call_operand.hbm [shape: f32[1,128], index: 7, kind: input, shape index: {}]   ;;  %s2362_s8 = inlined_call_operand.vmem [shape: bf16[128,128], index: 8, kind: input, shape index: {}]   ;;  %s2363_s9 = inlined_call_operand.hbm [shape: f32[1,128], index: 9, kind: input, shape index: {}]   ;;  %s2364_s10 = inlined_call_operand.hbm [shape: bf16[256,128], index: 10, kind: input, shape index: {}]   ;;  %s2365_s11 = inlined_call_operand.hbm [shape: f32[1,128], index: 11, kind: input, shape index: {}]   ;;  %s2366_s12 = inlined_call_operand.vmem [shape: bf16[128,2], index: 12, kind: input, shape index: {}]   ;;  %s2367_s13 = inlined_call_operand.hbm [shape: f32[1,2], index: 13, kind: input, shape index: {}]   ;;  %s2368_s14 = inlined_call_operand.vmem [shape: f32[8,2], index: 14, kind: output, shape index: {}]  }
   0x1   :  { %20 = vsyncpa [#allocation5], 0 }
   0x2   :  { %21 = vsyncpa [#allocation8], 0 }
   0x3   :  { %22 = vsyncpa [#allocation11], 0 }
   0x4   :  { %23 = vsyncpa [#allocation14], 0 }
   0x5   :  { %24 = vsyncpa [#allocation17], 0  ;;  %s2146_s29 = smov [#allocation4]  }
   0x6   :  { %s42_s30 = sshll.u32 %s2146_s29, 4  ;;  %s43_s30 = int_to_ptr.vmem [resolvable:$true] %s42_s30 }
   0x7   :  { %s1942_s15 = scalar_lea.vmem %s43_s30, 6144  ;;  %p1947_p1 = scmp.lt.s32.totalorder %s43_s30, %s43_s30 }
   0x8   :  { %p1943_p0 = scmp.ne.s32.totalorder %s43_s30, %s1942_s15  ;;  %p1948_p2 = scmp.lt.s32.totalorder %s1942_s15, %s1942_s15 }
   0xa   :  { %p1949_p3 = por %p1948_p2, %p1947_p1 }
   0xc   :  { %p1950_p4 = pnand %p1949_p3, %p1943_p0 }
   0xe   :  { %1953 = shalt.err (!%p1950_p4)
}
   0xf   :  { %s2147_s16 = smov 192   ;;  %s2148_s17 = smov 12  }
  0x10   :  { %48 = dma.hbm_to_vmem [thread:$0]  %s2356_s2, 6144, %s43_s30, [#allocation5], %s2147_s16, %s2147_s16, %s2148_s17  }
  0x11   :  { %s2149_s20 = smov [#allocation7]   ;;  %s2150_s22 = smov [#allocation10]  }
  0x12   :  { %s66_s21 = sshll.u32 %s2149_s20, 4  ;;  %s89_s23 = sshll.u32 %s2150_s22, 4  ;;  %s67_s21 = int_to_ptr.vmem [resolvable:$true] %s66_s21  ;;  %s90_s23 = int_to_ptr.vmem [resolvable:$true] %s89_s23 }
  0x13   :  { %s1962_s24 = scalar_lea.vmem %s67_s21, 6144  ;;  %p1967_p6 = scmp.lt.s32.totalorder %s67_s21, %s67_s21 }
  0x14   :  { %p1963_p5 = scmp.ne.s32.totalorder %s67_s21, %s1962_s24  ;;  %p1968_p7 = scmp.lt.s32.totalorder %s1962_s24, %s1962_s24 }
  0x16   :  { %p1969_p8 = por %p1968_p7, %p1967_p6 }
  0x18   :  { %p1970_p9 = pnand %p1969_p8, %p1963_p5 }
  0x1a   :  { %1973 = shalt.err (!%p1970_p9)
}
  0x1b   :  { %72 = dma.hbm_to_vmem [thread:$0]  %s2359_s5, 6144, %s67_s21, [#allocation8], %s2147_s16, %s2147_s16, %s2148_s17  }
  0x1c   :  { %s1982_s27 = scalar_lea.vmem %s90_s23, 16  ;;  %s1986_s2 = scalar_lea.vmem %s90_s23, 32 }
  0x1d   :  { %p1983_p10 = scmp.ne.s32.totalorder %s90_s23, %s1982_s27  ;;  %p1987_p11 = scmp.lt.s32.totalorder %s90_s23, %s90_s23 }
  0x1e   :  { %p1988_p12 = scmp.lt.s32.totalorder %s1986_s2, %s1982_s27 }
  0x20   :  { %p1989_p13 = por %p1988_p12, %p1987_p11 }
  0x22   :  { %p1990_p0 = pnand %p1989_p13, %p1983_p10 }
  0x24   :  { %1993 = shalt.err (!%p1990_p0)
}
  0x25   :  { %92 = dma.hbm_to_vmem [thread:$0]  %s2361_s7, 16, %s90_s23, [#allocation11]  }
  0x26   :  { %s2151_s30 = smov [#allocation13]  }
  0x27   :  { %s110_s15 = sshll.u32 %s2151_s30, 4  ;;  %s111_s15 = int_to_ptr.vmem [resolvable:$true] %s110_s15 }
  0x28   :  { %s2002_s18 = scalar_lea.vmem %s111_s15, 2048  ;;  %p2007_p2 = scmp.lt.s32.totalorder %s111_s15, %s111_s15 }
  0x29   :  { %p2003_p1 = scmp.ne.s32.totalorder %s111_s15, %s2002_s18  ;;  %p2008_p3 = scmp.lt.s32.totalorder %s2002_s18, %s2002_s18 }
  0x2b   :  { %p2009_p4 = por %p2008_p3, %p2007_p2 }
  0x2d   :  { %p2010_p5 = pnand %p2009_p4, %p2003_p1 }
  0x2f   :  { %2013 = shalt.err (!%p2010_p5)
}
  0x30   :  { %s2152_s5 = smov 64   ;;  %s2153_s16 = smov 4  }
  0x31   :  { %116 = dma.hbm_to_vmem [thread:$0]  %s2364_s10, 2048, %s111_s15, [#allocation14], %s2152_s5, %s2152_s5, %s2153_s16  }
  0x32   :  { %s2154_s20 = smov [#allocation2]   ;;  %s2155_s22 = smov [#allocation6]  }
  0x33   :  { %s33_s21 = sshll.u32 %s2154_s20, 4  ;;  %s55_s7 = sshll.u32 %s2155_s22, 4  ;;  %s34_s21 = int_to_ptr.vmem [resolvable:$true] %s33_s21  ;;  %s56_s7 = int_to_ptr.vmem [resolvable:$true] %s55_s7 }
  0x34   :  { %s2022_s23 = scalar_lea.vmem %s34_s21, 256  ;;  %p2027_p7 = scmp.lt.s32.totalorder %s34_s21, %s34_s21 }
  0x35   :  { %p2023_p6 = scmp.ne.s32.totalorder %s34_s21, %s2022_s23  ;;  %p2028_p8 = scmp.lt.s32.totalorder %s2022_s23, %s2022_s23 }
  0x37   :  { %p2029_p9 = por %p2028_p8, %p2027_p7 }
  0x39   :  { %p2030_p10 = pnand %p2029_p9, %p2023_p6 }
  0x3b   :  { %2033 = shalt.err (!%p2030_p10)
}
  0x3c   :  { %36 = dma.hbm_to_vmem [thread:$0]  %s2355_s1, 256, %s34_s21, [#allocation3]  }
  0x3d   :  { %s2042_s26 = scalar_lea.vmem %s56_s7, 48  ;;  %s2046_s10 = scalar_lea.vmem %s56_s7, 64 }
  0x3e   :  { %p2043_p11 = scmp.ne.s32.totalorder %s56_s7, %s2042_s26  ;;  %p2047_p12 = scmp.lt.s32.totalorder %s56_s7, %s56_s7 }
  0x3f   :  { %p2048_p13 = scmp.lt.s32.totalorder %s2046_s10, %s2042_s26 }
  0x41   :  { %p2049_p0 = por %p2048_p13, %p2047_p12 }
  0x43   :  { %p2050_p1 = pnand %p2049_p0, %p2043_p11 }
  0x45   :  { %2053 = shalt.err (!%p2050_p1)
}
  0x46   :  { %58 = dma.hbm_to_vmem [thread:$0]  %s2357_s3, 48, %s56_s7, [#allocation5]  }
  0x47   :  { %s2156_s28 = smov [#allocation9]   ;;  %s2157_s30 = smov [#allocation12]  }
  0x48   :  { %s79_s29 = sshll.u32 %s2156_s28, 4  ;;  %s101_s15 = sshll.u32 %s2157_s30, 4  ;;  %s80_s29 = int_to_ptr.vmem [resolvable:$true] %s79_s29  ;;  %s102_s15 = int_to_ptr.vmem [resolvable:$true] %s101_s15 }
  0x49   :  { %s2062_s18 = scalar_lea.vmem %s80_s29, 48  ;;  %s2066_s1 = scalar_lea.vmem %s80_s29, 64 }
  0x4a   :  { %p2063_p2 = scmp.ne.s32.totalorder %s80_s29, %s2062_s18  ;;  %p2067_p3 = scmp.lt.s32.totalorder %s80_s29, %s80_s29 }
  0x4b   :  { %p2068_p4 = scmp.lt.s32.totalorder %s2066_s1, %s2062_s18 }
  0x4d   :  { %p2069_p5 = por %p2068_p4, %p2067_p3 }
  0x4f   :  { %p2070_p6 = pnand %p2069_p5, %p2063_p2 }
  0x51   :  { %2073 = shalt.err (!%p2070_p6)
}
  0x52   :  { %82 = dma.hbm_to_vmem [thread:$0]  %s2360_s6, 48, %s80_s29, [#allocation8]  }
  0x53   :  { %s2082_s17 = scalar_lea.vmem %s102_s15, 16  ;;  %s2086_s3 = scalar_lea.vmem %s102_s15, 32 }
  0x54   :  { %p2083_p7 = scmp.ne.s32.totalorder %s102_s15, %s2082_s17  ;;  %p2087_p8 = scmp.lt.s32.totalorder %s102_s15, %s102_s15 }
  0x55   :  { %p2088_p9 = scmp.lt.s32.totalorder %s2086_s3, %s2082_s17 }
  0x57   :  { %p2089_p10 = por %p2088_p9, %p2087_p8 }
  0x59   :  { %p2090_p11 = pnand %p2089_p10, %p2083_p7 }
  0x5b   :  { %2093 = shalt.err (!%p2090_p11)
}
  0x5c   :  { %104 = dma.hbm_to_vmem [thread:$0]  %s2363_s9, 16, %s102_s15, [#allocation11]  }
  0x5d   :  { %s2158_s21 = smov [#allocation15]   ;;  %s2159_s7 = smov [#allocation16]  }
  0x5e   :  { %s123_s22 = sshll.u32 %s2158_s21, 4  ;;  %s135_s23 = sshll.u32 %s2159_s7, 4  ;;  %s124_s22 = int_to_ptr.vmem [resolvable:$true] %s123_s22  ;;  %s136_s23 = int_to_ptr.vmem [resolvable:$true] %s135_s23 }
  0x5f   :  { %s2102_s24 = scalar_lea.vmem %s124_s22, 16  ;;  %s2106_s6 = scalar_lea.vmem %s124_s22, 32 }
  0x60   :  { %p2103_p12 = scmp.ne.s32.totalorder %s124_s22, %s2102_s24  ;;  %p2107_p13 = scmp.lt.s32.totalorder %s124_s22, %s124_s22 }
  0x61   :  { %p2108_p0 = scmp.lt.s32.totalorder %s2106_s6, %s2102_s24 }
  0x63   :  { %p2109_p1 = por %p2108_p0, %p2107_p13 }
  0x65   :  { %p2110_p2 = pnand %p2109_p1, %p2103_p12 }
  0x67   :  { %2113 = shalt.err (!%p2110_p2)
}
  0x68   :  { %126 = dma.hbm_to_vmem [thread:$0]  %s2365_s11, 16, %s124_s22, [#allocation14]  }
  0x69   :  { %s2122_s10 = scalar_lea.vmem %s136_s23, 16  ;;  %s2126_s9 = scalar_lea.vmem %s136_s23, 32 }
  0x6a   :  { %p2123_p3 = scmp.ne.s32.totalorder %s136_s23, %s2122_s10  ;;  %p2127_p4 = scmp.lt.s32.totalorder %s136_s23, %s136_s23 }
  0x6b   :  { %p2128_p5 = scmp.lt.s32.totalorder %s2126_s9, %s2122_s10 }
  0x6d   :  { %p2129_p6 = por %p2128_p5, %p2127_p4 }
  0x6f   :  { %p2130_p7 = pnand %p2129_p6, %p2123_p3 }
  0x71   :  { %2133 = shalt.err (!%p2130_p7)
}
  0x72   :  { %138 = dma.hbm_to_vmem [thread:$0]  %s2367_s13, 16, %s136_s23, [#allocation17]  }
  0x73   :  { %2134 = dma.done.wait [#allocation3], 256  }
  0x74   :  { %2135 = vsyncadd [#allocation3], 4294967040 }
  0x75   :  { %2136 = dma.done.wait [#allocation5], 6192  }
  0x76   :  { %2137 = vsyncadd [#allocation5], 4294961104 }
  0x77   :  { %2138 = dma.done.wait [#allocation8], 6192  }
  0x78   :  { %2139 = vsyncadd [#allocation8], 4294961104 }
  0x79   :  { %2140 = dma.done.wait [#allocation11], 32  }
  0x7a   :  { %2141 = vsyncadd [#allocation11], 4294967264 }
  0x7b   :  { %2142 = dma.done.wait [#allocation14], 2064  }
  0x7c   :  { %2143 = vsyncadd [#allocation14], 4294965232 }
  0x7d   :  { %2144 = dma.done.wait [#allocation17], 16  }
  0x7e   :  { %2145 = vsyncadd [#allocation17], 4294967280  ;;  %v1754_v0 = vld [vmem:[#allocation4 + $0xac] ss:$12 sps:$4 sm:$0xff]   ;;  %v1756_v1 = vld [vmem:[#allocation4 + $0x170] ss:$12 sps:$4 sm:$0xff]  }
  0x7f   :  { %511 = vmatprep.subr.bf16.mxu0 %v1754_v0  ;;  %v1757_v2 = vld [vmem:[#allocation4 + $0xa8] ss:$12 sps:$4 sm:$0xff]   ;;  %1614 = vmatprep.subr.bf16.mxu1 %v1756_v1  ;;  %v1758_v3 = vld [vmem:[#allocation4 + $0xb0] ss:$12 sps:$4 sm:$0xff]   ;;  %v1761_v5 = vld [vmem:[#allocation4 + $0x158] ss:$12 sps:$4 sm:$0xff]  }
  0x80   :  { %512 = vmatpush1.bf16.msra.mxu0 %v1757_v2  ;;  %v1759_v4 = vld [vmem:[#allocation4 + $0x94] ss:$12 sps:$4 sm:$0xff]   ;;  %1615 = vmatpush3.bf16.msra.mxu1 %v1758_v3  ;;  %v1762_v6 = vld [vmem:[#allocation4 + $0x90] ss:$12 sps:$4 sm:$0xff]   ;;  %v1763_v7 = vld [vmem:[#allocation4 + $0x98] ss:$12 sps:$4 sm:$0xff]  }
  0x81   :  { %513 = vmatprep.subr.bf16.mxu0 %v1759_v4  ;;  %1616 = vmatprep.subr.bf16.mxu1 %v1761_v5  ;;  %v1764_v8 = vld [vmem:[#allocation4 + $0x7c] ss:$12 sps:$4 sm:$0xff]   ;;  %v1766_v9 = vld [vmem:[#allocation4 + $0x140] ss:$12 sps:$4 sm:$0xff]   ;;  %v1767_v10 = vld [vmem:[#allocation4 + $0x78] ss:$12 sps:$4 sm:$0xff]  }
  0x82   :  { %v1768_v11 = vld [vmem:[#allocation4 + $0x80] ss:$12 sps:$4 sm:$0xff]   ;;  %v1769_v12 = vld [vmem:[#allocation4 + $0x64] ss:$12 sps:$4 sm:$0xff]   ;;  %v1771_v13 = vld [vmem:[#allocation4 + $0x128] ss:$12 sps:$4 sm:$0xff]  }
  0x83   :  { %v1772_v14 = vld [vmem:[#allocation4 + $0x60] ss:$12 sps:$4 sm:$0xff]   ;;  %v1773_v15 = vld [vmem:[#allocation4 + $0x68] ss:$12 sps:$4 sm:$0xff]   ;;  %v1776_v17 = vld [vmem:[#allocation4 + $0x110] ss:$12 sps:$4 sm:$0xff]  }
  0x84   :  { %514 = vmatpush1.bf16.msra.mxu0 %v1762_v6  ;;  %1617 = vmatpush3.bf16.msra.mxu1 %v1763_v7  ;;  %v1774_v16 = vld [vmem:[#allocation4 + $0x4c] ss:$12 sps:$4 sm:$0xff]   ;;  %v1777_v18 = vld [vmem:[#allocation4 + $0x48] ss:$12 sps:$4 sm:$0xff]   ;;  %v1778_v19 = vld [vmem:[#allocation4 + $0x50] ss:$12 sps:$4 sm:$0xff]  }
  0x85   :  { %515 = vmatprep.subr.bf16.mxu0 %v1764_v8  ;;  %1618 = vmatprep.subr.bf16.mxu1 %v1766_v9  ;;  %v1779_v20 = vld [vmem:[#allocation4 + $0x34] ss:$12 sps:$4 sm:$0xff]   ;;  %v1781_v21 = vld [vmem:[#allocation4 + $0xf8] ss:$12 sps:$4 sm:$0xff]   ;;  %v1782_v22 = vld [vmem:[#allocation4 + $0x30] ss:$12 sps:$4 sm:$0xff]  }
  0x86   :  { %v1783_v23 = vld [vmem:[#allocation4 + $0x38] ss:$12 sps:$4 sm:$0xff]   ;;  %v1784_v24 = vld [vmem:[#allocation4 + $0x1c] ss:$12 sps:$4 sm:$0xff]   ;;  %v1786_v25 = vld [vmem:[#allocation4 + $0xe0] ss:$12 sps:$4 sm:$0xff]  }
  0x87   :  { %v1787_v26 = vld [vmem:[#allocation4 + $0x18] ss:$12 sps:$4 sm:$0xff]   ;;  %v1788_v27 = vld [vmem:[#allocation4 + $0x20] ss:$12 sps:$4 sm:$0xff]   ;;  %v1791_v29 = vld [vmem:[#allocation4 + $0xc8] ss:$12 sps:$4 sm:$0xff]  }
  0x88   :  { %516 = vmatpush1.bf16.msra.mxu0 %v1767_v10  ;;  %1619 = vmatpush3.bf16.msra.mxu1 %v1768_v11  ;;  %v1789_v28 = vld [vmem:[#allocation4 + $0x4] ss:$12 sps:$4 sm:$0xff]   ;;  %v171_v30 = vld [vmem:[%s2354_s0 + $0x8] sm:$0xff]  ;;  %v1792_v32 = vld [vmem:[#allocation4] ss:$12 sps:$4 sm:$0xff]   ;;  %vm2161_vm0 = vmmov 0  }
  0x89   :  { %517 = vmatprep.subr.bf16.mxu0 %v1769_v12  ;;  %1620 = vmatprep.subr.bf16.mxu1 %v1771_v13  ;;  %v173_v31 = vpack.c.bf16 %v171_v30, %v171_v30  ;;  %v1793_v33 = vld [vmem:[#allocation4 + $0x8] ss:$12 sps:$4 sm:$0xff]   ;;  %v1794_v34 = vld [vmem:[#allocation4 + $0x16c] ss:$12 sps:$4 sm:$0xff]   ;;  %v1798_v36 = vld [vmem:[#allocation7 + $0xac] ss:$12 sps:$4 sm:$0xff]  }
  0x8a   :  { %v170_v35 = vld [vmem:[%s2354_s0] sm:$0xff]  ;;  %v1796_v38 = vld [vmem:[#allocation7 + $0xa8] ss:$12 sps:$4 sm:$0xff]   ;;  %v1806_v44 = vld [vmem:[#allocation4 + $0x13c] ss:$12 sps:$4 sm:$0xff]   ;;  %vm1465_vm1 = vcmask 15360  }
  0x8b   :  { %584 = vmatprep.mubr.bf16.mxu1 %v173_v31  ;;  %543 = vmatprep.mubr.bf16.mxu0 %v173_v31  ;;  %v2273_v37 = vpack.c.bf16 %v170_v35, %v170_v35  ;;  %v1799_v39 = vld [vmem:[#allocation4 + $0x168] ss:$12 sps:$4 sm:$0xff]   ;;  %v1804_v41 = vld [vmem:[#allocation7 + $0x94] ss:$12 sps:$4 sm:$0xff]   ;;  %v1805_v42 = vld [vmem:[#allocation4 + $0x150] ss:$12 sps:$4 sm:$0xff]  }
  0x8c   :  { %518 = vmatpush1.bf16.msra.mxu0 %v1772_v14  ;;  %1621 = vmatpush3.bf16.msra.mxu1 %v1773_v15  ;;  %v1800_v40 = vld [vmem:[#allocation4 + $0x154] ss:$12 sps:$4 sm:$0xff]   ;;  %v1808_v46 = vld [vmem:[#allocation7 + $0x78] ss:$12 sps:$4 sm:$0xff]   ;;  %v1811_v47 = vld [vmem:[#allocation4 + $0x138] ss:$12 sps:$4 sm:$0xff]  }
  0x8d   :  { %519 = vmatprep.subr.bf16.mxu0 %v1774_v16  ;;  %1622 = vmatprep.subr.bf16.mxu1 %v1776_v17  ;;  %v1802_v43 = vld [vmem:[#allocation7 + $0x90] ss:$12 sps:$4 sm:$0xff]   ;;  %v1812_v48 = vld [vmem:[#allocation4 + $0x124] ss:$12 sps:$4 sm:$0xff]   ;;  %v1818_v52 = vld [vmem:[#allocation4 + $0x10c] ss:$12 sps:$4 sm:$0xff]  }
  0x8e   :  { %v1810_v45 = vld [vmem:[#allocation7 + $0x7c] ss:$12 sps:$4 sm:$0xff]   ;;  %v1816_v49 = vld [vmem:[#allocation7 + $0x64] ss:$12 sps:$4 sm:$0xff]   ;;  %v1814_v51 = vld [vmem:[#allocation7 + $0x60] ss:$12 sps:$4 sm:$0xff]  }
  0x8f   :  { %v1817_v50 = vld [vmem:[#allocation4 + $0x120] ss:$12 sps:$4 sm:$0xff]   ;;  %v1822_v53 = vld [vmem:[#allocation7 + $0x4c] ss:$12 sps:$4 sm:$0xff]   ;;  %v1823_v54 = vld [vmem:[#allocation4 + $0x108] ss:$12 sps:$4 sm:$0xff]  }
  0x90   :  { %520 = vmatpush1.bf16.msra.mxu0 %v1777_v18  ;;  %1623 = vmatpush3.bf16.msra.mxu1 %v1778_v19  ;;  %v1820_v55 = vld [vmem:[#allocation7 + $0x48] ss:$12 sps:$4 sm:$0xff]   ;;  %v1824_v56 = vld [vmem:[#allocation4 + $0xf4] ss:$12 sps:$4 sm:$0xff]   ;;  %v1829_v58 = vld [vmem:[#allocation4 + $0xf0] ss:$12 sps:$4 sm:$0xff]  }
  0x91   :  { %521 = vmatprep.subr.bf16.mxu0 %v1779_v20  ;;  %1624 = vmatprep.subr.bf16.mxu1 %v1781_v21  ;;  %v1828_v57 = vld [vmem:[#allocation7 + $0x34] ss:$12 sps:$4 sm:$0xff]   ;;  %v1826_v59 = vld [vmem:[#allocation7 + $0x30] ss:$12 sps:$4 sm:$0xff]   ;;  %v1830_v60 = vld [vmem:[#allocation4 + $0xdc] ss:$12 sps:$4 sm:$0xff]  }
  0x92   :  { %v1834_v61 = vld [vmem:[#allocation7 + $0x1c] ss:$12 sps:$4 sm:$0xff]   ;;  %v1835_v62 = vld [vmem:[#allocation4 + $0xd8] ss:$12 sps:$4 sm:$0xff]   ;;  %v1832_v63 = vld [vmem:[#allocation7 + $0x18] ss:$12 sps:$4 sm:$0xff]  }
  0x93   :  { %v1836_v0 = vld [vmem:[#allocation4 + $0xc4] ss:$12 sps:$4 sm:$0xff]   ;;  %v1840_v1 = vld [vmem:[#allocation7 + $0x4] ss:$12 sps:$4 sm:$0xff]   ;;  %v1841_v3 = vld [vmem:[#allocation4 + $0xc0] ss:$12 sps:$4 sm:$0xff]  }
  0x94   :  { %522 = vmatpush1.bf16.msra.mxu0 %v1782_v22  ;;  %1625 = vmatpush3.bf16.msra.mxu1 %v1783_v23  ;;  %v1838_v2 = vld [vmem:[#allocation7] ss:$12 sps:$4 sm:$0xff]   ;;  %v1863_v4 = vld [vmem:[#allocation7 + $0x170] ss:$12 sps:$4 sm:$0xff]   ;;  %v1842_v6 = vld [vmem:[#allocation7 + $0x168] ss:$12 sps:$4 sm:$0xff]  }
  0x95   :  { %523 = vmatprep.subr.bf16.mxu0 %v1784_v24  ;;  %1626 = vmatprep.subr.bf16.mxu1 %v1786_v25  ;;  %v1844_v5 = vld [vmem:[#allocation7 + $0x16c] ss:$12 sps:$4 sm:$0xff]   ;;  %v1864_v8 = vld [vmem:[#allocation7 + $0xb0] ss:$12 sps:$4 sm:$0xff]   ;;  %v1847_v11 = vld [vmem:[#allocation7 + $0x154] ss:$12 sps:$4 sm:$0xff]  }
  0x96   :  { %v617_v7 = vld [vmem:[#allocation2 + $0x8] sm:$0xff]  ;;  %v1845_v12 = vld [vmem:[#allocation7 + $0x150] ss:$12 sps:$4 sm:$0xff]   ;;  %v1870_v14 = vld [vmem:[#allocation7 + $0x140] ss:$12 sps:$4 sm:$0xff]  }
  0x97   :  { %v619_v9 = vpack.c.bf16 %v617_v7, %v617_v7  ;;  %v1868_v10 = vld [vmem:[#allocation7 + $0x158] ss:$12 sps:$4 sm:$0xff]   ;;  %v1850_v15 = vld [vmem:[#allocation7 + $0x13c] ss:$12 sps:$4 sm:$0xff]   ;;  %v1871_v18 = vld [vmem:[#allocation7 + $0x80] ss:$12 sps:$4 sm:$0xff]  }
  0x98   :  { %524 = vmatpush1.bf16.msra.mxu0 %v1787_v26  ;;  %1627 = vmatpush3.bf16.msra.mxu1 %v1788_v27  ;;  %v1869_v13 = vld [vmem:[#allocation7 + $0x98] ss:$12 sps:$4 sm:$0xff]   ;;  %v1872_v19 = vld [vmem:[#allocation7 + $0x128] ss:$12 sps:$4 sm:$0xff]   ;;  %v1851_v21 = vld [vmem:[#allocation7 + $0x120] ss:$12 sps:$4 sm:$0xff]  }
  0x99   :  { %525 = vmatprep.subr.bf16.mxu0 %v1789_v28  ;;  %1628 = vmatprep.subr.bf16.mxu1 %v1791_v29  ;;  %v1848_v16 = vld [vmem:[#allocation7 + $0x138] ss:$12 sps:$4 sm:$0xff]   ;;  %v1873_v20 = vld [vmem:[#allocation7 + $0x68] ss:$12 sps:$4 sm:$0xff]   ;;  %v1874_v22 = vld [vmem:[#allocation7 + $0x110] ss:$12 sps:$4 sm:$0xff]  }
  0x9a   :  { %v1853_v17 = vld [vmem:[#allocation7 + $0x124] ss:$12 sps:$4 sm:$0xff]   ;;  %v1856_v23 = vld [vmem:[#allocation7 + $0x10c] ss:$12 sps:$4 sm:$0xff]   ;;  %v1854_v25 = vld [vmem:[#allocation7 + $0x108] ss:$12 sps:$4 sm:$0xff]  }
  0x9b   :  { %v1875_v24 = vld [vmem:[#allocation7 + $0x50] ss:$12 sps:$4 sm:$0xff]   ;;  %v1876_v26 = vld [vmem:[#allocation7 + $0xf8] ss:$12 sps:$4 sm:$0xff]   ;;  %v1859_v27 = vld [vmem:[#allocation7 + $0xf4] ss:$12 sps:$4 sm:$0xff]  }
  0x9c   :  { %526 = vmatpush1.bf16.msra.mxu0 %v1792_v32  ;;  %1629 = vmatpush3.bf16.msra.mxu1 %v1793_v33  ;;  %v1877_v28 = vld [vmem:[#allocation7 + $0x38] ss:$12 sps:$4 sm:$0xff]   ;;  %v1857_v29 = vld [vmem:[#allocation7 + $0xf0] ss:$12 sps:$4 sm:$0xff]   ;;  %v1878_v30 = vld [vmem:[#allocation7 + $0xe0] ss:$12 sps:$4 sm:$0xff]  }
  0x9d   :  { %527 = vmatprep.subr.bf16.mxu0 %v1794_v34  ;;  %957 = vmatprep.subr.bf16.mxu1 %v1798_v36  ;;  %v1862_v31 = vld [vmem:[#allocation7 + $0xdc] ss:$12 sps:$4 sm:$0xff]   ;;  %v1879_v32 = vld [vmem:[#allocation7 + $0x20] ss:$12 sps:$4 sm:$0xff]   ;;  %v1860_v33 = vld [vmem:[#allocation7 + $0xd8] ss:$12 sps:$4 sm:$0xff]  }
  0x9e   :  { %v1880_v34 = vld [vmem:[#allocation7 + $0xc8] ss:$12 sps:$4 sm:$0xff]   ;;  %v1867_v35 = vld [vmem:[#allocation7 + $0xc4] ss:$12 sps:$4 sm:$0xff]  }
  0x9f   :  { %585 = vmatmul.mubr.bf16.vlgmr.msra.gmra.mxu1 %v2273_v37  ;;  %v1881_v36 = vld [vmem:[#allocation7 + $0x8] ss:$12 sps:$4 sm:$0xff]  }
  0xa0   :  { %528 = vmatpush2.bf16.msra.mxu0 %v1799_v39  ;;  %958 = vmatpush1.bf16.msra.mxu1 %v1796_v38  ;;  %v616_v38 = vld [vmem:[#allocation2] sm:$0xff] }
  0xa1   :  { %529 = vmatprep.subr.bf16.mxu0 %v1800_v40  ;;  %959 = vmatprep.subr.bf16.mxu1 %v1804_v41  ;;  %v618_v39 = vpack.c.bf16 %v616_v38, %v616_v38  ;;  %v1882_v40 = vld [vmem:[%s2362_s8 + $0x38] sm:$0xff]   ;;  %v2160_v41 = vmov 0.0  }
  0xa2   :  { %989 = vmatprep.mubr.bf16.mxu1 %v619_v9 }
  0xa4   :  { %530 = vmatpush2.bf16.msra.mxu0 %v1805_v42  ;;  %960 = vmatpush1.bf16.msra.mxu1 %v1802_v43  ;;  %v1883_v42 = vld [vmem:[%s2362_s8 + $0x30] sm:$0xff]   ;;  %v1884_v43 = vld [vmem:[%s2362_s8 + $0x28] sm:$0xff]  }
  0xa5   :  { %531 = vmatprep.subr.bf16.mxu0 %v1806_v44  ;;  %961 = vmatprep.subr.bf16.mxu1 %v1810_v45  ;;  %v1885_v44 = vld [vmem:[%s2362_s8 + $0x20] sm:$0xff]   ;;  %v1886_v45 = vld [vmem:[%s2362_s8 + $0x18] sm:$0xff]  }
  0xa8   :  { %532 = vmatpush2.bf16.msra.mxu0 %v1811_v47  ;;  %962 = vmatpush1.bf16.msra.mxu1 %v1808_v46  ;;  %v1887_v46 = vld [vmem:[%s2362_s8 + $0x10] sm:$0xff]   ;;  %v1888_v47 = vld [vmem:[%s2362_s8 + $0x8] sm:$0xff]  }
  0xa9   :  { %533 = vmatprep.subr.bf16.mxu0 %v1812_v48  ;;  %963 = vmatprep.subr.bf16.mxu1 %v1816_v49  ;;  %v1889_v48 = vld [vmem:[%s2362_s8] sm:$0xff]   ;;  %v1890_v49 = vld [vmem:[#allocation13 + $0x78] sm:$0xff]  }
  0xac   :  { %534 = vmatpush2.bf16.msra.mxu0 %v1817_v50  ;;  %964 = vmatpush1.bf16.msra.mxu1 %v1814_v51  ;;  %v1891_v50 = vld [vmem:[#allocation13 + $0x38] sm:$0xff]   ;;  %v1892_v51 = vld [vmem:[#allocation13 + $0x70] sm:$0xff]  }
  0xad   :  { %535 = vmatprep.subr.bf16.mxu0 %v1818_v52  ;;  %965 = vmatprep.subr.bf16.mxu1 %v1822_v53  ;;  %v1893_v52 = vld [vmem:[#allocation13 + $0x30] sm:$0xff]   ;;  %v1894_v53 = vld [vmem:[#allocation13 + $0x68] sm:$0xff]  }
  0xb0   :  { %536 = vmatpush2.bf16.msra.mxu0 %v1823_v54  ;;  %966 = vmatpush1.bf16.msra.mxu1 %v1820_v55  ;;  %v1895_v55 = vld [vmem:[#allocation13 + $0x28] sm:$0xff]  }
  0xb1   :  { %537 = vmatprep.subr.bf16.mxu0 %v1824_v56  ;;  %967 = vmatprep.subr.bf16.mxu1 %v1828_v57  ;;  %v1896_v56 = vld [vmem:[#allocation13 + $0x60] sm:$0xff]  }
  0xb4   :  { %538 = vmatpush2.bf16.msra.mxu0 %v1829_v58  ;;  %968 = vmatpush1.bf16.msra.mxu1 %v1826_v59 }
  0xb5   :  { %539 = vmatprep.subr.bf16.mxu0 %v1830_v60  ;;  %969 = vmatprep.subr.bf16.mxu1 %v1834_v61  ;;  %v1897_v60 = vld [vmem:[#allocation13 + $0x20] sm:$0xff]   ;;  %v1898_v61 = vld [vmem:[#allocation13 + $0x58] sm:$0xff]  }
  0xb8   :  { %540 = vmatpush2.bf16.msra.mxu0 %v1835_v62  ;;  %970 = vmatpush1.bf16.msra.mxu1 %v1832_v63  ;;  %v1899_v63 = vld [vmem:[#allocation13 + $0x18] sm:$0xff]  }
  0xb9   :  { %541 = vmatprep.subr.bf16.mxu0 %v1836_v0  ;;  %971 = vmatprep.subr.bf16.mxu1 %v1840_v1  ;;  %v1900_v0 = vld [vmem:[#allocation13 + $0x50] sm:$0xff]  }
  0xba   :  { %v1901_v1 = vld [vmem:[#allocation13 + $0x10] sm:$0xff]  }
  0xbc   :  { %542 = vmatpush2.bf16.msra.mxu0 %v1841_v3  ;;  %972 = vmatpush1.bf16.msra.mxu1 %v1838_v2 }
  0xbd   :  { %1636 = vmatprep.subr.bf16.mxu0 %v1863_v4  ;;  %973 = vmatprep.subr.bf16.mxu1 %v1844_v5  ;;  %v240_v4 = vlaneseq }
  0xbf   :  { %544 = vmatmul.mubr.bf16.vlgmr.msra.gmra.mxu0 %v2273_v37  ;;  %v1865_v37 = vld [vmem:[#allocation7 + $0xc0] ss:$12 sps:$4 sm:$0xff]   ;;  %v241_v7 = vshrl.u32 %v240_v4, 7  ;;  %v1906_v4 = vld [vmem:[%s2366_s12 + $0x38] sm:$0xff]  }
  0xc0   :  { %1637 = vmatpush3.bf16.msra.mxu0 %v1864_v8  ;;  %1030 = vmatprep.mubr.bf16.mxu0 %v619_v9  ;;  %v238_v9 = vld [vmem:[#allocation6] sm:$0x7] }
  0xc1   :  { %974 = vmatpush2.bf16.msra.mxu1 %v1842_v6  ;;  %1638 = vmatprep.subr.bf16.mxu0 %v1868_v10  ;;  %v242_v8 = vsub.s32 0, %v241_v7 }
  0xc2   :  { %975 = vmatprep.subr.bf16.mxu1 %v1847_v11 }
  0xc3   :  { %v243_v10 = vrot.slane %v238_v9, %v242_v8 }
  0xc4   :  { %1639 = vmatpush3.bf16.msra.mxu0 %v1869_v13  ;;  %v684_v13 = vld [vmem:[#allocation9] sm:$0x7] }
  0xc5   :  { %976 = vmatpush2.bf16.msra.mxu1 %v1845_v12  ;;  %1640 = vmatprep.subr.bf16.mxu0 %v1870_v14  ;;  %v246_v14 = vsub.s32 1, %v241_v7 }
  0xc6   :  { %977 = vmatprep.subr.bf16.mxu1 %v1850_v15  ;;  %v689_v15 = vrot.slane %v684_v13, %v242_v8  ;;  %v1910_v8 = vld [vmem:[%s2366_s12 + $0x18] sm:$0xff]  }
  0xc8   :  { %1641 = vmatpush3.bf16.msra.mxu0 %v1871_v18 }
  0xc9   :  { %978 = vmatpush2.bf16.msra.mxu1 %v1848_v16  ;;  %1642 = vmatprep.subr.bf16.mxu0 %v1872_v19 }
  0xca   :  { %979 = vmatprep.subr.bf16.mxu1 %v1853_v17  ;;  %v247_v17 = vrot.slane %v238_v9, %v246_v14 }
  0xcc   :  { %1643 = vmatpush3.bf16.msra.mxu0 %v1873_v20 }
  0xcd   :  { %980 = vmatpush2.bf16.msra.mxu1 %v1851_v21  ;;  %1644 = vmatprep.subr.bf16.mxu0 %v1874_v22 }
  0xce   :  { %981 = vmatprep.subr.bf16.mxu1 %v1856_v23  ;;  %v693_v23 = vrot.slane %v684_v13, %v246_v14 }
  0xd0   :  { %1645 = vmatpush3.bf16.msra.mxu0 %v1875_v24 }
  0xd1   :  { %982 = vmatpush2.bf16.msra.mxu1 %v1854_v25  ;;  %1646 = vmatprep.subr.bf16.mxu0 %v1876_v26 }
  0xd2   :  { %983 = vmatprep.subr.bf16.mxu1 %v1859_v27 }
  0xd4   :  { %1647 = vmatpush3.bf16.msra.mxu0 %v1877_v28 }
  0xd5   :  { %984 = vmatpush2.bf16.msra.mxu1 %v1857_v29  ;;  %1648 = vmatprep.subr.bf16.mxu0 %v1878_v30 }
  0xd6   :  { %985 = vmatprep.subr.bf16.mxu1 %v1862_v31 }
  0xd8   :  { %1649 = vmatpush3.bf16.msra.mxu0 %v1879_v32 }
  0xd9   :  { %986 = vmatpush2.bf16.msra.mxu1 %v1860_v33  ;;  %1650 = vmatprep.subr.bf16.mxu0 %v1880_v34 }
  0xda   :  { %987 = vmatprep.subr.bf16.mxu1 %v1867_v35 }
  0xdc   :  { %1651 = vmatpush3.bf16.msra.mxu0 %v1881_v36  ;;  %v250_v36 = vsub.s32 2, %v241_v7  ;;  %v1909_v7 = vld [vmem:[%s2366_s12 + $0x20] sm:$0xff]  }
  0xdd   :  { %988 = vmatpush2.bf16.msra.mxu1 %v1865_v37  ;;  %1698 = vmatprep.subr.bf16.mxu0 %v2160_v41 }
  0xde   :  { %1667 = vmatprep.subr.bf16.mxu1 %v1890_v49  ;;  %v1578_v49 = vld [vmem:[#allocation10] ss:$0 sm:$0xff] }
  0xdf   :  { %1031 = vmatmul.mubr.bf16.vlgmr.msra.gmra.mxu0 %v618_v39 }
  0xe0   :  { %990 = vmatmul.mubr.bf16.vlgmr.msra.gmra.mxu1 %v618_v39  ;;  %1699 = vmatpush3.bf16.msra.mxu0 %v1882_v40  ;;  %v1527_v39 = vld [vmem:[%s2358_s4] ss:$0 sm:$0xff]  ;;  %v251_v40 = vrot.slane %v238_v9, %v250_v36 }
  0xe1   :  { %1700 = vmatprep.subr.bf16.mxu0 %v2160_v41  ;;  %1714 = vmatprep.mubr.msk.bf16.mxu0 %vm2161_vm0, %v2160_v41 }
  0xe2   :  { %1668 = vmatpush3.bf16.msra.mxu1 %v1891_v50 }
  0xe3   :  { %1669 = vmatprep.subr.bf16.mxu1 %v1892_v51 }
  0xe4   :  { %1701 = vmatpush3.bf16.msra.mxu0 %v1883_v42 }
  0xe5   :  { %1702 = vmatprep.subr.bf16.mxu0 %v2160_v41 }
  0xe6   :  { %1670 = vmatpush3.bf16.msra.mxu1 %v1893_v52 }
  0xe7   :  { %1671 = vmatprep.subr.bf16.mxu1 %v1894_v53 }
  0xe8   :  { %1703 = vmatpush3.bf16.msra.mxu0 %v1884_v43 }
  0xe9   :  { %1704 = vmatprep.subr.bf16.mxu0 %v2160_v41 }
  0xea   :  { %1672 = vmatpush3.bf16.msra.mxu1 %v1895_v55 }
  0xeb   :  { %1673 = vmatprep.subr.bf16.mxu1 %v1896_v56 }
  0xec   :  { %1705 = vmatpush3.bf16.msra.mxu0 %v1885_v44 }
  0xed   :  { %1706 = vmatprep.subr.bf16.mxu0 %v2160_v41 }
  0xee   :  { %1674 = vmatpush3.bf16.msra.mxu1 %v1897_v60 }
  0xef   :  { %1675 = vmatprep.subr.bf16.mxu1 %v1898_v61 }
  0xf0   :  { %1707 = vmatpush3.bf16.msra.mxu0 %v1886_v45 }
  0xf1   :  { %1708 = vmatprep.subr.bf16.mxu0 %v2160_v41 }
  0xf2   :  { %1676 = vmatpush3.bf16.msra.mxu1 %v1899_v63 }
  0xf3   :  { %1677 = vmatprep.subr.bf16.mxu1 %v1900_v0  ;;  %v1902_v0 = vld [vmem:[#allocation13 + $0x48] sm:$0xff]  }
  0xf4   :  { %1709 = vmatpush3.bf16.msra.mxu0 %v1887_v46 }
  0xf5   :  { %1710 = vmatprep.subr.bf16.mxu0 %v2160_v41 }
  0xf6   :  { %1678 = vmatpush3.bf16.msra.mxu1 %v1901_v1  ;;  %v1903_v1 = vld [vmem:[#allocation13 + $0x8] sm:$0xff]  }
  0xf7   :  { %1679 = vmatprep.subr.bf16.mxu1 %v1902_v0 }
  0xf8   :  { %1711 = vmatpush3.bf16.msra.mxu0 %v1888_v47  ;;  %v697_v47 = vrot.slane %v684_v13, %v250_v36 }
  0xf9   :  { %1712 = vmatprep.subr.bf16.mxu0 %v2160_v41 }
  0xfa   :  { %1680 = vmatpush3.bf16.msra.mxu1 %v1903_v1 }
  0xfc   :  { %1713 = vmatpush3.bf16.msra.mxu0 %v1889_v48 }
  0xfd   :  { %1718 = vmatprep.subr.bf16.mxu0 %v2160_v41 }
 0x15f   :  { %v1630_v54 = vpop.f32.mrf.mxu1 }
 0x161   :  { %v1631_v57 = vpop.f32.mrf.mxu1 }
 0x162   :  { %v2312_v58 = vadd.f32 %v1631_v57, %v1630_v54 }
 0x163   :  { %v1633_v59 = vpop.f32.mrf.mxu1 }
 0x164   :  { %v587_v45 = vadd.f32 %v2312_v58, %v251_v40 }
 0x165   :  { %v1634_v62 = vpop.f32.mrf.mxu1 }
 0x17f   :  { %v545_v2 = vpop.f32.mrf.mxu0 }
 0x180   :  { %v546_v11 = vadd.f32 %v545_v2, %v243_v10  ;;  %v1904_v2 = vld [vmem:[#allocation13 + $0x40] sm:$0xff]   ;;  %v1579_v10 = vld [vmem:[#allocation12] ss:$0 sm:$0xff] }
 0x181   :  { %v547_v3 = vpop.f32.mrf.mxu0  ;;  %1681 = vmatprep.subr.bf16.mxu1 %v1904_v2 }
 0x182   :  { %v1525_v12 = vmul.f32 -1.442695, %v546_v11  ;;  %v548_v25 = vadd.f32 %v547_v3, %v247_v17  ;;  %v1905_v3 = vld [vmem:[#allocation13] sm:$0xff]  }
 0x183   :  { %v549_v5 = vpop.f32.mrf.mxu0  ;;  %1682 = vmatpush3.bf16.msra.mxu1 %v1905_v3 }
 0x184   :  { %1914 = vpow2.f32 %v1525_v12  ;;  %v1526_v31 = vmul.f32 -1.442695, %v548_v25  ;;  %v1907_v5 = vld [vmem:[%s2366_s12 + $0x30] sm:$0xff]  }
 0x185   :  { %v550_v6 = vpop.f32.mrf.mxu0 }
 0x186   :  { %v1908_v6 = vld [vmem:[%s2366_s12 + $0x28] sm:$0xff]  }
 0x191   :  { %v1915_v28 = vpop.eup %1914 }
 0x192   :  { %v595_v32 = vadd.f32 1.0, %v1915_v28 }
 0x19f   :  { %v1652_v16 = vpop.f32.mrf.mxu0 }
 0x1a0   :  { %v991_v18 = vpop.f32.mrf.mxu1 }
 0x1a1   :  { %v992_v19 = vadd.f32 %v991_v18, %v689_v15  ;;  %v1653_v20 = vpop.f32.mrf.mxu0  ;;  %v1911_v18 = vld [vmem:[%s2366_s12 + $0x10] sm:$0xff]  }
 0x1a2   :  { %v993_v21 = vpop.f32.mrf.mxu1  ;;  %v1654_v48 = vadd.f32 %v1653_v20, %v1652_v16  ;;  %v1913_v20 = vld [vmem:[%s2366_s12] sm:$0xff]  }
 0x1a3   :  { %v1576_v22 = vmul.f32 -1.442695, %v992_v19  ;;  %v1655_v24 = vpop.f32.mrf.mxu0  ;;  %v994_v30 = vadd.f32 %v993_v21, %v693_v23  ;;  %v1912_v19 = vld [vmem:[%s2366_s12 + $0x8] sm:$0xff]  }
 0x1a4   :  { %v995_v26 = vpop.f32.mrf.mxu1  ;;  %v1033_v52 = vadd.f32 %v1654_v48, %v697_v47 }
 0x1a5   :  { %1916 = vpow2.f32 %v1576_v22  ;;  %v1656_v27 = vpop.f32.mrf.mxu0  ;;  %v1577_v33 = vmul.f32 -1.442695, %v994_v30  ;;  %v1588_v22 = vld [vmem:[#allocation15] ss:$0 sm:$0xff]  ;;  %v1605_v30 = vld [vmem:[#allocation16] ss:$0 sm:$0xff] }
 0x1a6   :  { %v996_v29 = vpop.f32.mrf.mxu1  ;;  %1918 = vpow2.f32 %v1526_v31 }
 0x1a7   :  { %1920 = vrcp.f32 %v595_v32 }
 0x1a8   :  { %1922 = vpow2.f32 %v1577_v33 }
 0x1b2   :  { %v1917_v34 = vpop.eup %1916 }
 0x1b3   :  { %v1041_v35 = vadd.f32 1.0, %v1917_v34  ;;  %v1919_v37 = vpop.eup %1918 }
 0x1b4   :  { %v1921_v38 = vpop.eup %1920  ;;  %v601_v44 = vadd.f32 1.0, %v1919_v37 }
 0x1b5   :  { %1924 = vrcp.f32 %v1041_v35  ;;  %v1923_v42 = vpop.eup %1922  ;;  %v611_v43 = vmul.f32 %v1921_v38, %v1527_v39 }
 0x1b6   :  { %v1047_v46 = vadd.f32 1.0, %v1923_v42  ;;  %1926 = vrcp.f32 %v601_v44 }
 0x1b7   :  { %v612_v50 = vadd.f32 %v611_v43, %v587_v45 }
 0x1b8   :  { %1928 = vrcp.f32 %v1047_v46 }
 0x1b9   :  { %1930 = vtanh.f32 %v612_v50 }
 0x1c2   :  { %v1925_v51 = vpop.eup %1924 }
 0x1c3   :  { %v1057_v53 = vmul.f32 %v1925_v51, %v1578_v49  ;;  %v1927_v55 = vpop.eup %1926 }
 0x1c4   :  { %v614_v57 = vsub.f32 1.0, %v1927_v55 }
 0x1c5   :  { %v1058_v54 = vadd.f32 %v1057_v53, %v1033_v52  ;;  %v1929_v56 = vpop.eup %1928 }
 0x1c6   :  { %v1931_v59 = vpop.eup %1930  ;;  %v1060_v60 = vsub.f32 1.0, %v1929_v56 }
 0x1c7   :  { %1932 = vtanh.f32 %v1058_v54  ;;  %v615_v58 = vmul.f32 %v1931_v59, %v614_v57 }
 0x1d4   :  { %v1933_v61 = vpop.eup %1932 }
 0x1d5   :  { %v1061_v62 = vmul.f32 %v1933_v61, %v1060_v60 }
 0x1d7   :  { %v1062_v63 = vpack.c.bf16 %v1061_v62, %v615_v58 }
 0x1d9   :  { %1715 = vmatmul.mubr.bf16.vlgmr.msra.gmra.mxu0 %v1062_v63 }
 0x1da   :  { %1734 = vmatprep.mubr.msk.bf16.mxu0 %vm2161_vm0, %v2160_v41  ;;  %1719 = vmatpush3.bf16.msra.mxu0 %v1906_v4 }
 0x1db   :  { %1720 = vmatprep.subr.bf16.mxu0 %v2160_v41 }
 0x1de   :  { %1721 = vmatpush3.bf16.msra.mxu0 %v1907_v5 }
 0x1df   :  { %1722 = vmatprep.subr.bf16.mxu0 %v2160_v41 }
 0x1e2   :  { %1723 = vmatpush3.bf16.msra.mxu0 %v1908_v6 }
 0x1e3   :  { %1724 = vmatprep.subr.bf16.mxu0 %v2160_v41 }
 0x1e6   :  { %1725 = vmatpush3.bf16.msra.mxu0 %v1909_v7 }
 0x1e7   :  { %1726 = vmatprep.subr.bf16.mxu0 %v2160_v41 }
 0x1ea   :  { %1727 = vmatpush3.bf16.msra.mxu0 %v1910_v8 }
 0x1eb   :  { %1728 = vmatprep.subr.bf16.mxu0 %v2160_v41 }
 0x1ee   :  { %1729 = vmatpush3.bf16.msra.mxu0 %v1911_v18 }
 0x1ef   :  { %1730 = vmatprep.subr.bf16.mxu0 %v2160_v41 }
 0x1f2   :  { %1731 = vmatpush3.bf16.msra.mxu0 %v1912_v19 }
 0x1f3   :  { %1732 = vmatprep.subr.bf16.mxu0 %v2160_v41 }
 0x1f6   :  { %1733 = vmatpush3.bf16.msra.mxu0 %v1913_v20 }
 0x299   :  { %v1168_v9 = vpop.f32.mrf.mxu0 }
 0x29a   :  { %v1169_v12 = vadd.f32 %v1579_v10, %v1168_v9 }
 0x29b   :  { %v1716_v11 = vpop.f32.mrf.mxu0 }
 0x29c   :  { %v1175_v17 = vpack.c.bf16 %v1169_v12, %v1169_v12 }
 0x29d   :  { %v1171_v13 = vpop.f32.mrf.mxu0 }
 0x29e   :  { %v1172_v14 = vadd.f32 %v1579_v10, %v1171_v13 }
 0x29f   :  { %v1717_v15 = vpop.f32.mrf.mxu0 }
 0x2a0   :  { %v1176_v16 = vpack.c.bf16 %v1172_v14, %v1172_v14 }
 0x2a2   :  { %1344 = vmatprep.mubr.bf16.mxu1 %v1176_v16 }
 0x2a3   :  { %1345 = vmatmul.mubr.bf16.vlgmr.msra.gmra.mxu1 %v1175_v17 }
 0x363   :  { %v1683_v21 = vpop.f32.mrf.mxu1 }
 0x365   :  { %v1684_v23 = vpop.f32.mrf.mxu1 }
 0x366   :  { %v1685_v24 = vadd.f32 %v1684_v23, %v1683_v21 }
 0x367   :  { %v1686_v25 = vpop.f32.mrf.mxu1 }
 0x368   :  { %v1347_v26 = vadd.f32 %v1685_v24, %v1588_v22 }
 0x369   :  { %v1687_v27 = vpop.f32.mrf.mxu1 }
 0x36a   :  { %v1352_v28 = vmax.f32 %v1347_v26, 0.0 }
 0x36c   :  { %v1353_v29 = vpack.c.bf16 %v1352_v28, %v1352_v28 }
 0x36e   :  { %1735 = vmatmul.mubr.bf16.vlgmr.msra.gmra.mxu0 %v1353_v29 }
 0x42e   :  { %v1459_v31 = vpop.f32.mrf.mxu0 }
 0x42f   :  { %v1460_v32 = vadd.f32 %v1605_v30, %v1459_v31 }
 0x430   :  { %v1736_v41 = vpop.f32.mrf.mxu0 }
 0x431   :  { %1466 = vst.msk [vmem:[%s2368_s14] sm:$0xff] %vm1465_vm1, %v1460_v32 }
 0x432   :  { %v1462_v33 = vpop.f32.mrf.mxu0 }
 0x434   :  { %v1737_v34 = vpop.f32.mrf.mxu0 }
 0x435   :  { %1471 = vsyncpa [#allocation3], 1 }
 0x436   :  { %1472 = vsyncpa [#allocation5], 1 }
 0x437   :  { %1473 = vsyncpa [#allocation8], 1 }
 0x438   :  { %1474 = vsyncpa [#allocation11], 1 }
 0x439   :  { %1475 = vsyncpa [#allocation14], 1 }
 0x43a   :  { %1476 = vsyncpa [#allocation17], 1 }

</bundles_post_ra>
